<compile_context>
chip_gen: v6e
topology: v6e:2x2x1
jax: 0.10.0
libtpu: 0.0.40
codegen_flags: <defaults>
</compile_context>

<pallas_src>
import functools
import math

import numpy as np
import jax
import jax.numpy as jnp
from jax import lax
from jax.experimental import pallas as pl
from jax.experimental.pallas import tpu as pltpu

BASE_STEP = 4          # stand-in for cfg.MODEL.global_stride (in-script constant)
_EPS = 1e-5
_LOG_LO = math.log(1e-6)          # log(clip lower bound)
_LOG_HI = math.log(1.0 - 1e-6)    # log(clip upper bound)


def _atan_nonneg(x):
    """float32 atan for x >= 0 (Cephes atanf reduction + minimax poly).

    Mosaic has no native atan lowering, so the CIoU aspect-ratio term uses this
    in-kernel polynomial.  The x > tan(3pi/8) branch uses an approx reciprocal
    (EUP); its error is attenuated by |1/x| <= 0.414 through the polynomial."""
    tan3pio8 = 2.414213562373095
    tanpio8 = 0.4142135623730951
    big = x > tan3pio8
    mid = jnp.logical_and(jnp.logical_not(big), x > tanpio8)
    y = jnp.where(big, jnp.float32(np.pi / 2.0),
                  jnp.where(mid, jnp.float32(np.pi / 4.0), jnp.float32(0.0)))
    xr = jnp.where(big, -pl.reciprocal(jnp.maximum(x, 1e-30), approx=True),
                   jnp.where(mid, (x - 1.0) / (x + 1.0), x))
    z = xr * xr
    p = (((8.05374449538e-2 * z - 1.38776856032e-1) * z
          + 1.99777106478e-1) * z - 3.33329491539e-1) * z * xr + xr
    return y + p


def centernet_loss_kernel(has_pos_ref, hm_pred_ref, hm_gt_ref, pred_wh_ref,
                          wh_tgt_ref, mask_ref, out_ref, *, base_step, slab):
    f32 = jnp.float32
    tile_h = mask_ref.shape[1]
    w_lanes = mask_ref.shape[2]
    n_slabs = tile_h // slab
    b = pl.program_id(0)
    r = pl.program_id(1)

    # ----------------- focal loss: slab loop, merged pos/neg branch -----------------
    def focal_body(s, carry):
        loss_s, npos_s = carry
        row0 = pl.multiple_of(s * slab, slab)
        gt = hm_gt_ref[0, :, pl.ds(row0, slab), :].astype(f32)    # (C, slab, W)
        x = hm_pred_ref[0, :, pl.ds(row0, slab), :].astype(f32)   # logits

        # NOTE: exact equality matches the torch .eq(1) semantics; assumes targets
        # store positives as exact 1.0 (breaks silently if gt is bf16-rounded upstream).
        is_pos = gt == 1.0
        omg = 1.0 - gt
        omg2 = omg * omg
        neg_w = omg2 * omg2                 # (1 - gt) ** 4

        # EUP-lean sigmoid/log path:
        #   t = exp(-x); p = 1/(1+t); log p = -log(1+t); log(1-p) = -x - log(1+t)
        # Clamping the logs to [log 1e-6, log(1-1e-6)] is equivalent to the
        # reference's clip(p, 1e-6, 1-1e-6) before log.
        t = jnp.exp(-x)
        log1pt = jnp.log(1.0 + t)
        p = jnp.clip(1.0 / (1.0 + t), 1e-6, 1.0 - 1e-6)
        log_p = jnp.clip(-log1pt, _LOG_LO, _LOG_HI)
        log_1mp = jnp.clip(-x - log1pt, _LOG_LO, _LOG_HI)

        omp = 1.0 - p
        # merged pos/neg branches: one select, one reduction
        loss = jnp.where(is_pos, log_p * omp * omp, log_1mp * p * p * neg_w)
        return (loss_s + jnp.sum(loss), npos_s + jnp.sum(is_pos.astype(f32)))

    loss_sum, num_pos = lax.fori_loop(
        0, n_slabs, focal_body,
        (jnp.zeros((), f32), jnp.zeros((), f32)), unroll=True)

    # ----------------- CIoU: slab loop, skipped entirely on empty tiles -----------------
    w_sum = jnp.sum(mask_ref[0].astype(f32))

    # Per-slab base grid (x, y) at stride `base_step`; hoisted iotas.
    xs = (lax.broadcasted_iota(jnp.int32, (slab, w_lanes), 1) * base_step).astype(f32)
    ys_iota = lax.broadcasted_iota(jnp.int32, (slab, w_lanes), 0)

    def ciou_body(s, acc):
        row0 = pl.multiple_of(s * slab, slab)
        ys = ((ys_iota + (r * tile_h + row0)) * base_step).astype(f32)
        pw0 = pred_wh_ref[0, 0, pl.ds(row0, slab), :].astype(f32)
        pw1 = pred_wh_ref[0, 1, pl.ds(row0, slab), :].astype(f32)
        pw2 = pred_wh_ref[0, 2, pl.ds(row0, slab), :].astype(f32)
        pw3 = pred_wh_ref[0, 3, pl.ds(row0, slab), :].astype(f32)
        tx1 = wh_tgt_ref[0, 0, pl.ds(row0, slab), :].astype(f32)
        ty1 = wh_tgt_ref[0, 1, pl.ds(row0, slab), :].astype(f32)
        tx2 = wh_tgt_ref[0, 2, pl.ds(row0, slab), :].astype(f32)
        ty2 = wh_tgt_ref[0, 3, pl.ds(row0, slab), :].astype(f32)
        wgt = mask_ref[0, pl.ds(row0, slab), :].astype(f32)

        # pred_boxes = base_loc - pred_wh * [1, 1, -1, -1]
        px1 = xs - pw0
        py1 = ys - pw1
        px2 = xs + pw2
        py2 = ys + pw3

        lt_x = jnp.maximum(px1, tx1)
        lt_y = jnp.maximum(py1, ty1)
        rb_x = jnp.minimum(px2, tx2)
        rb_y = jnp.minimum(py2, ty2)
        wh_x = jnp.maximum(rb_x - lt_x + 1.0, 0.0)
        wh_y = jnp.maximum(rb_y - lt_y + 1.0, 0.0)
        overlap = wh_x * wh_y
        ap = (px2 - px1 + 1.0) * (py2 - py1 + 1.0)
        ag = (tx2 - tx1 + 1.0) * (ty2 - ty1 + 1.0)
        # exact divide: this value feeds both cious and the ious > 0.5 threshold
        ious = overlap / (ap + ag - overlap)

        out_x = jnp.maximum(jnp.maximum(px2, tx2) - jnp.minimum(px1, tx1), 0.0)
        out_y = jnp.maximum(jnp.maximum(py2, ty2) - jnp.minimum(py1, ty1), 0.0)
        outer_diag = out_x * out_x + out_y * out_y

        # center distance: the +1 in both centers cancels -> fold constants
        cdx = (px1 + px2) - (tx1 + tx2)
        cdy = (py1 + py2) - (ty1 + ty2)
        center_dis = 0.25 * (cdx * cdx + cdy * cdy)

        s1w = jnp.maximum(px2 - px1, 0.0)
        s1h = jnp.maximum(py2 - py1, 0.0)
        s2w = jnp.maximum(tx2 - tx1, 0.0)
        s2h = jnp.maximum(ty2 - ty1, 0.0)
        d_atan = (_atan_nonneg(s2w * pl.reciprocal(s2h + _EPS, approx=True))
                  - _atan_nonneg(s1w * pl.reciprocal(s1h + _EPS, approx=True)))
        v = (4.0 / (math.pi ** 2)) * d_atan * d_atan
        S = (ious > 0.5).astype(f32)
        alpha = S * v * pl.reciprocal(1.0 - ious + v, approx=True)

        cious = 1.0 - (ious - center_dis / outer_diag - alpha * v)
        cious_w = cious * wgt
        # dense equivalent of the torch boolean-mask gather + NaN drop:
        valid = jnp.logical_and(wgt > 0.0, cious_w == cious_w)   # (x == x) <=> not NaN
        return acc + jnp.sum(jnp.where(valid, cious_w, 0.0))

    def write_out(ciou_val):
        rowi = lax.broadcasted_iota(jnp.int32, (8, 128), 0)
        tile = jnp.where(rowi == 0, loss_sum,
               jnp.where(rowi == 1, num_pos,
               jnp.where(rowi == 2, ciou_val,
               jnp.where(rowi == 3, w_sum, 0.0))))
        out_ref[0, 0] = tile

    has_pos = has_pos_ref[b, r]      # SMEM scalar-prefetch flag: any nonzero weight?

    @pl.when(has_pos > 0)
    def _():
        write_out(lax.fori_loop(0, n_slabs, ciou_body,
                                jnp.zeros((), f32), unroll=True))

    @pl.when(has_pos == 0)
    def _():
        # all weights in this tile are zero -> CIoU contribution is exactly 0
        write_out(jnp.zeros((), f32))


def _vmem_limit_bytes():
    """Generation-aware scoped-VMEM limit: <= 3/4 of physical VMEM, capped at
    48 MiB (respects v7x's 64 MiB physical; well above the <= ~16 MiB of
    double-buffered inputs the tile picker allows)."""
    try:
        phys = pltpu.get_tpu_info().vmem_capacity_bytes
    except Exception:
        phys = 128 * 1024 * 1024
    return int(min(48 * 1024 * 1024, (phys * 3) // 4))


def _pick_tile_h(H, C, W, itemsizes, batch, *, step_budget_bytes=8 * 1024 * 1024,
                 max_tile=64, min_steps=4):
    """Largest row-tile (multiple of 8, dividing H, <= max_tile) whose
    single-buffered input footprint fits step_budget_bytes (double buffering
    then stays well inside the vmem limit), preferring tiles that keep
    batch * (H // tile) >= min_steps grid steps so v7x's two TensorCores
    both get work.  Uses the real per-input dtypes."""
    ihm, igt, iwh, itgt, imask = itemsizes
    per_row = W * (C * (ihm + igt) + 4 * (iwh + itgt) + imask)
    if H % 8 != 0 or H <= 8:
        return H                                   # full-extent fallback
    cands = [t for t in range(8, min(H, max_tile) + 1, 8)
             if H % t == 0 and per_row * t <= step_budget_bytes]
    if not cands:
        return 8
    for need in (min_steps, 2, 1):
        good = [t for t in cands if batch * (H // t) >= need]
        if good:
            return max(good)
    return max(cands)


def centernet_loss(pred_hm, pred_wh, hm_target, wh_target, weights,
                   base_step=BASE_STEP, tile_h=None):
    """pred_hm: (B,C,H,W) logits, pred_wh: (B,4,H,W),
       hm_target: (B,H,W,C), wh_target: (B,H,W,4), weights: (B,H,W,1)."""
    B, C, H, W = pred_hm.shape
    # Predictions stay in native NCHW / native dtype (upcast in-kernel); only the
    # NHWC targets get one transpose each (see TODO at top of file).
    hm_gt = jnp.transpose(hm_target, (0, 3, 1, 2))     # (B, C, H, W)
    wh_tgt = jnp.transpose(wh_target, (0, 3, 1, 2))    # (B, 4, H, W)
    mask = weights.reshape(B, H, W)

    if tile_h is None:
        itemsizes = (pred_hm.dtype.itemsize, hm_gt.dtype.itemsize,
                     pred_wh.dtype.itemsize, wh_tgt.dtype.itemsize,
                     mask.dtype.itemsize)
        tile_h = _pick_tile_h(H, C, W, itemsizes, B)
    assert H % tile_h == 0, (H, tile_h)
    n_row_blocks = H // tile_h
    slab = 8 if tile_h % 8 == 0 else tile_h

    # Per-tile "has any nonzero weight" flags -> SMEM scalar prefetch; lets the
    # kernel skip the whole CIoU section on weight-empty tiles.
    has_pos = (jnp.sum(jnp.abs(mask).reshape(B, n_row_blocks, tile_h, W),
                       axis=(2, 3)) > 0.0).astype(jnp.int32)

    kernel = functools.partial(centernet_loss_kernel,
                               base_step=base_step, slab=slab)
    partials = pl.pallas_call(
        kernel,
        out_shape=jax.ShapeDtypeStruct((B, n_row_blocks, 8, 128), jnp.float32),
        grid_spec=pltpu.PrefetchScalarGridSpec(
            num_scalar_prefetch=1,
            grid=(B, n_row_blocks),
            in_specs=[
                pl.BlockSpec((1, C, tile_h, W), lambda b, r, flags: (b, 0, r, 0)),
                pl.BlockSpec((1, C, tile_h, W), lambda b, r, flags: (b, 0, r, 0)),
                pl.BlockSpec((1, 4, tile_h, W), lambda b, r, flags: (b, 0, r, 0)),
                pl.BlockSpec((1, 4, tile_h, W), lambda b, r, flags: (b, 0, r, 0)),
                pl.BlockSpec((1, tile_h, W), lambda b, r, flags: (b, r, 0)),
            ],
            out_specs=pl.BlockSpec((1, 1, 8, 128), lambda b, r, flags: (b, r, 0, 0)),
        ),
        compiler_params=pltpu.CompilerParams(
            dimension_semantics=("parallel", "parallel"),
            vmem_limit_bytes=_vmem_limit_bytes()),
    )(has_pos, pred_hm, hm_gt, pred_wh, wh_tgt, mask)

    # Tiny finalization in plain JAX (keeps the grid fully parallel / megacore-friendly).
    totals = jnp.sum(partials[..., 0], axis=(0, 1))    # (8,)
    loss_sum, num_pos = totals[0], totals[1]
    ciou_sum, w_sum = totals[2], totals[3]
    hm_loss = -loss_sum / jnp.maximum(num_pos, 1.0)
    wh_loss = ciou_sum / (w_sum + 0.0001)
    return hm_loss, wh_loss * 5.0


# ------------------- pure-JAX reference (mirrors the torch code) -------------------
def centernet_loss_ref(pred_hm, pred_wh, hm_target, wh_target, weights_):
    B, C, H, W = pred_hm.shape
    hm = jnp.transpose(pred_hm, (0, 2, 3, 1))
    gt = hm_target
    pos = (gt == 1.0).astype(jnp.float32)
    neg = 1.0 - pos
    neg_w = (1.0 - gt) ** 4
    p = 1.0 / (1.0 + jnp.exp(-hm))
    p = jnp.clip(p, 1e-6, 1.0 - 1e-6)
    pos_loss = jnp.sum(jnp.log(p) * (1.0 - p) ** 2 * pos)
    neg_loss = jnp.sum(jnp.log(1.0 - p) * p ** 2 * neg_w * neg)
    num_pos = jnp.sum(pos)
    hm_loss = -(pos_loss + neg_loss) / jnp.maximum(num_pos, 1.0)

    mask = weights_.reshape(B, H, W)
    avg_factor = jnp.sum(mask) + 0.0001
    sx = jnp.arange(W, dtype=jnp.int32) * BASE_STEP
    sy = jnp.arange(H, dtype=jnp.int32) * BASE_STEP
    yy, xx = jnp.meshgrid(sy, sx, indexing='ij')
    base_loc = jnp.stack([xx, yy, xx, yy], 0)[None].astype(jnp.float32)
    sign = jnp.array([1.0, 1.0, -1.0, -1.0], jnp.float32).reshape(1, 4, 1, 1)
    pred_boxes = base_loc - pred_wh * sign
    b1 = jnp.transpose(pred_boxes, (0, 2, 3, 1))
    b2 = wh_target
    lt = jnp.maximum(b1[..., :2], b2[..., :2])
    rb = jnp.minimum(b1[..., 2:], b2[..., 2:])
    wh = jnp.clip(rb - lt + 1.0, 0.0)
    overlap = wh[..., 0] * wh[..., 1]
    ap = (b1[..., 2] - b1[..., 0] + 1) * (b1[..., 3] - b1[..., 1] + 1)
    ag = (b2[..., 2] - b2[..., 0] + 1) * (b2[..., 3] - b2[..., 1] + 1)
    ious = overlap / (ap + ag - overlap)
    olu = jnp.minimum(b1[..., :2], b2[..., :2])
    ord_ = jnp.maximum(b1[..., 2:], b2[..., 2:])
    outer = jnp.clip(ord_ - olu, 0.0)
    diag = outer[..., 0] ** 2 + outer[..., 1] ** 2
    c1 = (b1[..., :2] + b1[..., 2:] + 1) * 0.5
    c2 = (b2[..., :2] + b2[..., 2:] + 1) * 0.5
    cdis = (c1[..., 0] - c2[..., 0]) ** 2 + (c1[..., 1] - c2[..., 1]) ** 2
    s1 = jnp.clip(b1[..., 2:] - b1[..., :2], 0.0)
    s2 = jnp.clip(b2[..., 2:] - b2[..., :2], 0.0)
    v = 4.0 / np.pi ** 2 * (jnp.arctan(s2[..., 0] / (s2[..., 1] + _EPS))
                            - jnp.arctan(s1[..., 0] / (s1[..., 1] + _EPS))) ** 2
    S = (ious > 0.5).astype(jnp.float32)
    alpha = S * v / (1.0 - ious + v)
    cious = 1.0 - (ious - cdis / diag - alpha * v)
    cious_w = cious * mask
    valid = jnp.logical_and(mask > 0.0, jnp.logical_not(jnp.isnan(cious_w)))
    wh_loss = jnp.sum(jnp.where(valid, cious_w, 0.0)) / avg_factor
    return hm_loss, wh_loss * 5.0


if __name__ == "__main__":
    key = jax.random.PRNGKey(0)
    k1, k2, k3, k4, k5, k6 = jax.random.split(key, 6)
    B, C, H, W = 2, 4, 16, 16

    pred_hm = jax.random.normal(k1, (B, C, H, W), jnp.float32)          # logits, NCHW
    pred_wh = jnp.abs(jax.random.normal(k2, (B, 4, H, W), jnp.float32)) * 8.0

    hm_target = jax.random.uniform(k3, (B, H, W, C), jnp.float32) * 0.9
    pos_sites = jax.random.uniform(k4, (B, H, W, C)) < 0.02
    hm_target = jnp.where(pos_sites, 1.0, hm_target)

    weights = jnp.any(pos_sites, axis=-1, keepdims=True).astype(jnp.float32)  # (B,H,W,1)

    cy = (jnp.arange(H, dtype=jnp.float32) * BASE_STEP)[None, :, None]
    cx = (jnp.arange(W, dtype=jnp.float32) * BASE_STEP)[None, None, :]
    bw = jnp.abs(jax.random.normal(k5, (B, H, W), jnp.float32)) * 6.0 + 4.0
    bh = jnp.abs(jax.random.normal(k6, (B, H, W), jnp.float32)) * 6.0 + 4.0
    cxb = jnp.broadcast_to(cx, (B, H, W))
    cyb = jnp.broadcast_to(cy, (B, H, W))
    wh_target = jnp.stack(
        [cxb - bw * 0.5, cyb - bh * 0.5, cxb + bw * 0.5, cyb + bh * 0.5], axis=-1)

    zero_w = jnp.zeros_like(weights)   # exercises the weight-empty CIoU skip path

    cases = [
        # auto tile (picker -> tile_h=8, grid (2,2), single slab)
        centernet_loss(pred_hm, pred_wh, hm_target, wh_target, weights),
        # explicit larger tile (grid (2,1), 2-slab inner loop)
        centernet_loss(pred_hm, pred_wh, hm_target, wh_target, weights, tile_h=16),
        # all-zero weights: every tile takes the CIoU skip branch
        centernet_loss(pred_hm, pred_wh, hm_target, wh_target, zero_w),
    ]
    jax.block_until_ready(cases)

    refs = [
        centernet_loss_ref(pred_hm, pred_wh, hm_target, wh_target, weights),
        centernet_loss_ref(pred_hm, pred_wh, hm_target, wh_target, weights),
        centernet_loss_ref(pred_hm, pred_wh, hm_target, wh_target, zero_w),
    ]

    for (hm_k, wh_k), (hm_r, wh_r) in zip(cases, refs):
        assert np.allclose(np.asarray(hm_k), np.asarray(hm_r),
                           rtol=1e-3, atol=1e-3), (hm_k, hm_r)
        assert np.allclose(np.asarray(wh_k), np.asarray(wh_r),
                           rtol=1e-3, atol=1e-3), (wh_k, wh_r)
    print("KERNEL_OK")
</pallas_src>

<mosaic_0001>
module attributes {stable_mosaic.version = 11 : i64} {
  func.func @centernet_loss_kernel(%arg0: i32, %arg1: i32, %arg2: memref<2x2xi32, #tpu.memory_space<smem>>, %arg3: memref<1x4x8x16xf32, #tpu.memory_space<vmem>>, %arg4: memref<1x4x8x16xf32, #tpu.memory_space<vmem>>, %arg5: memref<1x4x8x16xf32, #tpu.memory_space<vmem>>, %arg6: memref<1x4x8x16xf32, #tpu.memory_space<vmem>>, %arg7: memref<1x8x16xf32, #tpu.memory_space<vmem>>, %arg8: memref<1x1x8x128xf32, #tpu.memory_space<vmem>>) attributes {dimension_semantics = [#tpu.dimension_semantics<parallel>, #tpu.dimension_semantics<parallel>], iteration_bounds = array<i64: 2, 2>, scalar_prefetch = 1 : i64, scratch_operands = 0 : i64, tpu.core_type = #tpu.core_type<tc>, window_params = [{transform_indices = @transform_0, window_bounds = array<i64: 1, 4, 8, 16>}, {transform_indices = @transform_1, window_bounds = array<i64: 1, 4, 8, 16>}, {transform_indices = @transform_2, window_bounds = array<i64: 1, 4, 8, 16>}, {transform_indices = @transform_3, window_bounds = array<i64: 1, 4, 8, 16>}, {transform_indices = @transform_4, window_bounds = array<i64: 1, 8, 16>}, {transform_indices = @transform_5, window_bounds = array<i64: 1, 1, 8, 128>}]} {
    %cst = arith.constant 0.000000e+00 : f32
    %cst_0 = arith.constant 0.000000e+00 : f32
    %c0_i32 = arith.constant 0 : i32
    %c8_i32 = arith.constant 8 : i32
    %0 = arith.muli %c0_i32, %c8_i32 : i32
    %1 = tpu.assume_multiple %0, 8 : i32
    %c0 = arith.constant 0 : index
    %c0_1 = arith.constant 0 : index
    %2 = arith.index_cast %1 : i32 to index
    %c0_2 = arith.constant 0 : index
    %3 = vector.load %arg4[%c0, %c0_1, %2, %c0_2] : memref<1x4x8x16xf32, #tpu.memory_space<vmem>>, vector<1x4x8x16xf32>
    %4 = vector.shape_cast %3 : vector<1x4x8x16xf32> to vector<4x8x16xf32>
    %c0_3 = arith.constant 0 : index
    %c0_4 = arith.constant 0 : index
    %5 = arith.index_cast %1 : i32 to index
    %c0_5 = arith.constant 0 : index
    %6 = vector.load %arg3[%c0_3, %c0_4, %5, %c0_5] : memref<1x4x8x16xf32, #tpu.memory_space<vmem>>, vector<1x4x8x16xf32>
    %7 = vector.shape_cast %6 : vector<1x4x8x16xf32> to vector<4x8x16xf32>
    %cst_6 = arith.constant 1.000000e+00 : f32
    %8 = vector.broadcast %cst_6 : f32 to vector<4x8x16xf32>
    %9 = arith.cmpf oeq, %4, %8 : vector<4x8x16xf32>
    %cst_7 = arith.constant 1.000000e+00 : f32
    %10 = vector.broadcast %cst_7 : f32 to vector<4x8x16xf32>
    %11 = arith.subf %10, %4 : vector<4x8x16xf32>
    %12 = arith.mulf %11, %11 : vector<4x8x16xf32>
    %13 = arith.mulf %12, %12 : vector<4x8x16xf32>
    %cst_8 = arith.constant 0.000000e+00 : f32
    %14 = vector.broadcast %cst_8 : f32 to vector<4x8x16xf32>
    %15 = arith.subf %14, %7 : vector<4x8x16xf32>
    %16 = math.exp %15 : vector<4x8x16xf32>
    %cst_9 = arith.constant 1.000000e+00 : f32
    %17 = vector.broadcast %cst_9 : f32 to vector<4x8x16xf32>
    %18 = arith.addf %17, %16 : vector<4x8x16xf32>
    %19 = math.log %18 : vector<4x8x16xf32>
    %cst_10 = arith.constant 1.000000e+00 : f32
    %20 = vector.broadcast %cst_10 : f32 to vector<4x8x16xf32>
    %21 = arith.addf %20, %16 : vector<4x8x16xf32>
    %cst_11 = arith.constant 1.000000e+00 : f32
    %22 = vector.broadcast %cst_11 : f32 to vector<4x8x16xf32>
    %23 = arith.divf %22, %21 : vector<4x8x16xf32>
    %cst_12 = arith.constant 9.99999997E-7 : f32
    %cst_13 = arith.constant 0.999998986 : f32
    %24 = vector.broadcast %cst_12 : f32 to vector<4x8x16xf32>
    %25 = arith.maximumf %24, %23 : vector<4x8x16xf32>
    %26 = vector.broadcast %cst_13 : f32 to vector<4x8x16xf32>
    %27 = arith.minimumf %26, %25 : vector<4x8x16xf32>
    %cst_14 = arith.constant 0.000000e+00 : f32
    %28 = vector.broadcast %cst_14 : f32 to vector<4x8x16xf32>
    %29 = arith.subf %28, %19 : vector<4x8x16xf32>
    %cst_15 = arith.constant -13.8155107 : f32
    %cst_16 = arith.constant -1.00000045E-6 : f32
    %30 = vector.broadcast %cst_15 : f32 to vector<4x8x16xf32>
    %31 = arith.maximumf %30, %29 : vector<4x8x16xf32>
    %32 = vector.broadcast %cst_16 : f32 to vector<4x8x16xf32>
    %33 = arith.minimumf %32, %31 : vector<4x8x16xf32>
    %cst_17 = arith.constant 0.000000e+00 : f32
    %34 = vector.broadcast %cst_17 : f32 to vector<4x8x16xf32>
    %35 = arith.subf %34, %7 : vector<4x8x16xf32>
    %36 = arith.subf %35, %19 : vector<4x8x16xf32>
    %cst_18 = arith.constant -13.8155107 : f32
    %cst_19 = arith.constant -1.00000045E-6 : f32
    %37 = vector.broadcast %cst_18 : f32 to vector<4x8x16xf32>
    %38 = arith.maximumf %37, %36 : vector<4x8x16xf32>
    %39 = vector.broadcast %cst_19 : f32 to vector<4x8x16xf32>
    %40 = arith.minimumf %39, %38 : vector<4x8x16xf32>
    %cst_20 = arith.constant 1.000000e+00 : f32
    %41 = vector.broadcast %cst_20 : f32 to vector<4x8x16xf32>
    %42 = arith.subf %41, %27 : vector<4x8x16xf32>
    %43 = arith.mulf %33, %42 : vector<4x8x16xf32>
    %44 = arith.mulf %43, %42 : vector<4x8x16xf32>
    %45 = arith.mulf %40, %27 : vector<4x8x16xf32>
    %46 = arith.mulf %45, %27 : vector<4x8x16xf32>
    %47 = arith.mulf %46, %13 : vector<4x8x16xf32>
    %48 = arith.select %9, %44, %47 : vector<4x8x16xi1>, vector<4x8x16xf32>
    %49 = vector.shape_cast %48 : vector<4x8x16xf32> to vector<1x4x8x16xf32>
    %cst_21 = arith.constant dense<0.000000e+00> : vector<1xf32>
    %50 = vector.multi_reduction <add>, %49, %cst_21 [1, 2, 3] : vector<1x4x8x16xf32> to vector<1xf32>
    %51 = vector.shape_cast %50 : vector<1xf32> to vector<1x1x1x1xf32>
    %52 = vector.extract %51[0, 0, 0, 0] : f32 from vector<1x1x1x1xf32>
    %53 = arith.addf %cst, %52 : f32
    %54 = arith.extui %9 : vector<4x8x16xi1> to vector<4x8x16xi32>
    %55 = arith.sitofp %54 : vector<4x8x16xi32> to vector<4x8x16xf32>
    %56 = vector.shape_cast %55 : vector<4x8x16xf32> to vector<1x4x8x16xf32>
    %cst_22 = arith.constant dense<0.000000e+00> : vector<1xf32>
    %57 = vector.multi_reduction <add>, %56, %cst_22 [1, 2, 3] : vector<1x4x8x16xf32> to vector<1xf32>
    %58 = vector.shape_cast %57 : vector<1xf32> to vector<1x1x1x1xf32>
    %59 = vector.extract %58[0, 0, 0, 0] : f32 from vector<1x1x1x1xf32>
    %60 = arith.addf %cst_0, %59 : f32
    %c1_i32 = arith.constant 1 : i32
    %c0_23 = arith.constant 0 : index
    %c0_24 = arith.constant 0 : index
    %c0_25 = arith.constant 0 : index
    %61 = vector.load %arg7[%c0_23, %c0_24, %c0_25] : memref<1x8x16xf32, #tpu.memory_space<vmem>>, vector<1x8x16xf32>
    %62 = vector.shape_cast %61 : vector<1x8x16xf32> to vector<8x16xf32>
    %63 = vector.shape_cast %62 : vector<8x16xf32> to vector<1x8x16xf32>
    %cst_26 = arith.constant dense<0.000000e+00> : vector<1xf32>
    %64 = vector.multi_reduction <add>, %63, %cst_26 [1, 2] : vector<1x8x16xf32> to vector<1xf32>
    %65 = vector.shape_cast %64 : vector<1xf32> to vector<1x1x1xf32>
    %66 = vector.extract %65[0, 0, 0] : f32 from vector<1x1x1xf32>
    %67 = tpu.iota {dimensions = array<i32: 1>} : vector<8x16xi32>
    %c4_i32 = arith.constant 4 : i32
    %68 = vector.broadcast %c4_i32 : i32 to vector<8x16xi32>
    %69 = arith.muli %67, %68 : vector<8x16xi32>
    %70 = arith.sitofp %69 : vector<8x16xi32> to vector<8x16xf32>
    %71 = tpu.iota {dimensions = array<i32: 0>} : vector<8x16xi32>
    %72 = arith.index_cast %arg0 : i32 to index
    %73 = arith.index_cast %arg1 : i32 to index
    %74 = memref.load %arg2[%72, %73] : memref<2x2xi32, #tpu.memory_space<smem>>
    %c0_i32_27 = arith.constant 0 : i32
    %75 = arith.cmpi sgt, %74, %c0_i32_27 : i32
    %76 = arith.extui %75 : i1 to i32
    %c0_i32_28 = arith.constant 0 : i32
    %77 = arith.cmpi ne, %76, %c0_i32_28 : i32
    scf.if %77 {
      %cst_31 = arith.constant 0.000000e+00 : f32
      %c0_i32_32 = arith.constant 0 : i32
      %c8_i32_33 = arith.constant 8 : i32
      %81 = arith.muli %c0_i32_32, %c8_i32_33 : i32
      %82 = tpu.assume_multiple %81, 8 : i32
      %c8_i32_34 = arith.constant 8 : i32
      %83 = arith.muli %arg1, %c8_i32_34 : i32
      %84 = arith.addi %83, %82 : i32
      %85 = vector.broadcast %84 : i32 to vector<8x16xi32>
      %86 = arith.addi %71, %85 : vector<8x16xi32>
      %c4_i32_35 = arith.constant 4 : i32
      %87 = vector.broadcast %c4_i32_35 : i32 to vector<8x16xi32>
      %88 = arith.muli %86, %87 : vector<8x16xi32>
      %89 = arith.sitofp %88 : vector<8x16xi32> to vector<8x16xf32>
      %c0_36 = arith.constant 0 : index
      %c0_37 = arith.constant 0 : index
      %90 = arith.index_cast %82 : i32 to index
      %c0_38 = arith.constant 0 : index
      %91 = vector.load %arg5[%c0_36, %c0_37, %90, %c0_38] : memref<1x4x8x16xf32, #tpu.memory_space<vmem>>, vector<1x1x8x16xf32>
      %92 = vector.shape_cast %91 : vector<1x1x8x16xf32> to vector<8x16xf32>
      %c0_39 = arith.constant 0 : index
      %c1 = arith.constant 1 : index
      %93 = arith.index_cast %82 : i32 to index
      %c0_40 = arith.constant 0 : index
      %94 = vector.load %arg5[%c0_39, %c1, %93, %c0_40] : memref<1x4x8x16xf32, #tpu.memory_space<vmem>>, vector<1x1x8x16xf32>
      %95 = vector.shape_cast %94 : vector<1x1x8x16xf32> to vector<8x16xf32>
      %c0_41 = arith.constant 0 : index
      %c2 = arith.constant 2 : index
      %96 = arith.index_cast %82 : i32 to index
      %c0_42 = arith.constant 0 : index
      %97 = vector.load %arg5[%c0_41, %c2, %96, %c0_42] : memref<1x4x8x16xf32, #tpu.memory_space<vmem>>, vector<1x1x8x16xf32>
      %98 = vector.shape_cast %97 : vector<1x1x8x16xf32> to vector<8x16xf32>
      %c0_43 = arith.constant 0 : index
      %c3 = arith.constant 3 : index
      %99 = arith.index_cast %82 : i32 to index
      %c0_44 = arith.constant 0 : index
      %100 = vector.load %arg5[%c0_43, %c3, %99, %c0_44] : memref<1x4x8x16xf32, #tpu.memory_space<vmem>>, vector<1x1x8x16xf32>
      %101 = vector.shape_cast %100 : vector<1x1x8x16xf32> to vector<8x16xf32>
      %c0_45 = arith.constant 0 : index
      %c0_46 = arith.constant 0 : index
      %102 = arith.index_cast %82 : i32 to index
      %c0_47 = arith.constant 0 : index
      %103 = vector.load %arg6[%c0_45, %c0_46, %102, %c0_47] : memref<1x4x8x16xf32, #tpu.memory_space<vmem>>, vector<1x1x8x16xf32>
      %104 = vector.shape_cast %103 : vector<1x1x8x16xf32> to vector<8x16xf32>
      %c0_48 = arith.constant 0 : index
      %c1_49 = arith.constant 1 : index
      %105 = arith.index_cast %82 : i32 to index
      %c0_50 = arith.constant 0 : index
      %106 = vector.load %arg6[%c0_48, %c1_49, %105, %c0_50] : memref<1x4x8x16xf32, #tpu.memory_space<vmem>>, vector<1x1x8x16xf32>
      %107 = vector.shape_cast %106 : vector<1x1x8x16xf32> to vector<8x16xf32>
      %c0_51 = arith.constant 0 : index
      %c2_52 = arith.constant 2 : index
      %108 = arith.index_cast %82 : i32 to index
      %c0_53 = arith.constant 0 : index
      %109 = vector.load %arg6[%c0_51, %c2_52, %108, %c0_53] : memref<1x4x8x16xf32, #tpu.memory_space<vmem>>, vector<1x1x8x16xf32>
      %110 = vector.shape_cast %109 : vector<1x1x8x16xf32> to vector<8x16xf32>
      %c0_54 = arith.constant 0 : index
      %c3_55 = arith.constant 3 : index
      %111 = arith.index_cast %82 : i32 to index
      %c0_56 = arith.constant 0 : index
      %112 = vector.load %arg6[%c0_54, %c3_55, %111, %c0_56] : memref<1x4x8x16xf32, #tpu.memory_space<vmem>>, vector<1x1x8x16xf32>
      %113 = vector.shape_cast %112 : vector<1x1x8x16xf32> to vector<8x16xf32>
      %c0_57 = arith.constant 0 : index
      %114 = arith.index_cast %82 : i32 to index
      %c0_58 = arith.constant 0 : index
      %115 = vector.load %arg7[%c0_57, %114, %c0_58] : memref<1x8x16xf32, #tpu.memory_space<vmem>>, vector<1x8x16xf32>
      %116 = vector.shape_cast %115 : vector<1x8x16xf32> to vector<8x16xf32>
      %117 = arith.subf %70, %92 : vector<8x16xf32>
      %118 = arith.subf %89, %95 : vector<8x16xf32>
      %119 = arith.addf %70, %98 : vector<8x16xf32>
      %120 = arith.addf %89, %101 : vector<8x16xf32>
      %121 = arith.maximumf %117, %104 : vector<8x16xf32>
      %122 = arith.maximumf %118, %107 : vector<8x16xf32>
      %123 = arith.minimumf %119, %110 : vector<8x16xf32>
      %124 = arith.minimumf %120, %113 : vector<8x16xf32>
      %125 = arith.subf %123, %121 : vector<8x16xf32>
      %cst_59 = arith.constant 1.000000e+00 : f32
      %126 = vector.broadcast %cst_59 : f32 to vector<8x16xf32>
      %127 = arith.addf %125, %126 : vector<8x16xf32>
      %cst_60 = arith.constant 0.000000e+00 : f32
      %128 = vector.broadcast %cst_60 : f32 to vector<8x16xf32>
      %129 = arith.maximumf %127, %128 : vector<8x16xf32>
      %130 = arith.subf %124, %122 : vector<8x16xf32>
      %cst_61 = arith.constant 1.000000e+00 : f32
      %131 = vector.broadcast %cst_61 : f32 to vector<8x16xf32>
      %132 = arith.addf %130, %131 : vector<8x16xf32>
      %cst_62 = arith.constant 0.000000e+00 : f32
      %133 = vector.broadcast %cst_62 : f32 to vector<8x16xf32>
      %134 = arith.maximumf %132, %133 : vector<8x16xf32>
      %135 = arith.mulf %129, %134 : vector<8x16xf32>
      %136 = arith.subf %119, %117 : vector<8x16xf32>
      %cst_63 = arith.constant 1.000000e+00 : f32
      %137 = vector.broadcast %cst_63 : f32 to vector<8x16xf32>
      %138 = arith.addf %136, %137 : vector<8x16xf32>
      %139 = arith.subf %120, %118 : vector<8x16xf32>
      %cst_64 = arith.constant 1.000000e+00 : f32
      %140 = vector.broadcast %cst_64 : f32 to vector<8x16xf32>
      %141 = arith.addf %139, %140 : vector<8x16xf32>
      %142 = arith.mulf %138, %141 : vector<8x16xf32>
      %143 = arith.subf %110, %104 : vector<8x16xf32>
      %cst_65 = arith.constant 1.000000e+00 : f32
      %144 = vector.broadcast %cst_65 : f32 to vector<8x16xf32>
      %145 = arith.addf %143, %144 : vector<8x16xf32>
      %146 = arith.subf %113, %107 : vector<8x16xf32>
      %cst_66 = arith.constant 1.000000e+00 : f32
      %147 = vector.broadcast %cst_66 : f32 to vector<8x16xf32>
      %148 = arith.addf %146, %147 : vector<8x16xf32>
      %149 = arith.mulf %145, %148 : vector<8x16xf32>
      %150 = arith.addf %142, %149 : vector<8x16xf32>
      %151 = arith.subf %150, %135 : vector<8x16xf32>
      %152 = arith.divf %135, %151 : vector<8x16xf32>
      %153 = arith.maximumf %119, %110 : vector<8x16xf32>
      %154 = arith.minimumf %117, %104 : vector<8x16xf32>
      %155 = arith.subf %153, %154 : vector<8x16xf32>
      %cst_67 = arith.constant 0.000000e+00 : f32
      %156 = vector.broadcast %cst_67 : f32 to vector<8x16xf32>
      %157 = arith.maximumf %155, %156 : vector<8x16xf32>
      %158 = arith.maximumf %120, %113 : vector<8x16xf32>
      %159 = arith.minimumf %118, %107 : vector<8x16xf32>
      %160 = arith.subf %158, %159 : vector<8x16xf32>
      %cst_68 = arith.constant 0.000000e+00 : f32
      %161 = vector.broadcast %cst_68 : f32 to vector<8x16xf32>
      %162 = arith.maximumf %160, %161 : vector<8x16xf32>
      %163 = arith.mulf %157, %157 : vector<8x16xf32>
      %164 = arith.mulf %162, %162 : vector<8x16xf32>
      %165 = arith.addf %163, %164 : vector<8x16xf32>
      %166 = arith.addf %117, %119 : vector<8x16xf32>
      %167 = arith.addf %104, %110 : vector<8x16xf32>
      %168 = arith.subf %166, %167 : vector<8x16xf32>
      %169 = arith.addf %118, %120 : vector<8x16xf32>
      %170 = arith.addf %107, %113 : vector<8x16xf32>
      %171 = arith.subf %169, %170 : vector<8x16xf32>
      %172 = arith.mulf %168, %168 : vector<8x16xf32>
      %173 = arith.mulf %171, %171 : vector<8x16xf32>
      %174 = arith.addf %172, %173 : vector<8x16xf32>
      %cst_69 = arith.constant 2.500000e-01 : f32
      %175 = vector.broadcast %cst_69 : f32 to vector<8x16xf32>
      %176 = arith.mulf %175, %174 : vector<8x16xf32>
      %177 = arith.subf %119, %117 : vector<8x16xf32>
      %cst_70 = arith.constant 0.000000e+00 : f32
      %178 = vector.broadcast %cst_70 : f32 to vector<8x16xf32>
      %179 = arith.maximumf %177, %178 : vector<8x16xf32>
      %180 = arith.subf %120, %118 : vector<8x16xf32>
      %cst_71 = arith.constant 0.000000e+00 : f32
      %181 = vector.broadcast %cst_71 : f32 to vector<8x16xf32>
      %182 = arith.maximumf %180, %181 : vector<8x16xf32>
      %183 = arith.subf %110, %104 : vector<8x16xf32>
      %cst_72 = arith.constant 0.000000e+00 : f32
      %184 = vector.broadcast %cst_72 : f32 to vector<8x16xf32>
      %185 = arith.maximumf %183, %184 : vector<8x16xf32>
      %186 = arith.subf %113, %107 : vector<8x16xf32>
      %cst_73 = arith.constant 0.000000e+00 : f32
      %187 = vector.broadcast %cst_73 : f32 to vector<8x16xf32>
      %188 = arith.maximumf %186, %187 : vector<8x16xf32>
      %cst_74 = arith.constant 9.99999974E-6 : f32
      %189 = vector.broadcast %cst_74 : f32 to vector<8x16xf32>
      %190 = arith.addf %188, %189 : vector<8x16xf32>
      %191 = tpu.reciprocal %190 {approx = true} : vector<8x16xf32> -> vector<8x16xf32>
      %192 = arith.mulf %185, %191 : vector<8x16xf32>
      %cst_75 = arith.constant 2.41421366 : f32
      %193 = vector.broadcast %cst_75 : f32 to vector<8x16xf32>
      %194 = arith.cmpf ogt, %192, %193 : vector<8x16xf32>
      %cst_76 = arith.constant dense<true> : vector<8x16xi1>
      %195 = arith.xori %194, %cst_76 : vector<8x16xi1>
      %cst_77 = arith.constant 0.414213568 : f32
      %196 = vector.broadcast %cst_77 : f32 to vector<8x16xf32>
      %197 = arith.cmpf ogt, %192, %196 : vector<8x16xf32>
      %198 = arith.andi %195, %197 : vector<8x16xi1>
      %cst_78 = arith.constant 0.785398185 : f32
      %cst_79 = arith.constant 0.000000e+00 : f32
      %199 = vector.broadcast %cst_78 : f32 to vector<8x16xf32>
      %200 = vector.broadcast %cst_79 : f32 to vector<8x16xf32>
      %201 = arith.select %198, %199, %200 : vector<8x16xi1>, vector<8x16xf32>
      %cst_80 = arith.constant 1.57079637 : f32
      %202 = vector.broadcast %cst_80 : f32 to vector<8x16xf32>
      %203 = arith.select %194, %202, %201 : vector<8x16xi1>, vector<8x16xf32>
      %cst_81 = arith.constant 1.000000e-30 : f32
      %204 = vector.broadcast %cst_81 : f32 to vector<8x16xf32>
      %205 = arith.maximumf %192, %204 : vector<8x16xf32>
      %206 = tpu.reciprocal %205 {approx = true} : vector<8x16xf32> -> vector<8x16xf32>
      %cst_82 = arith.constant 0.000000e+00 : f32
      %207 = vector.broadcast %cst_82 : f32 to vector<8x16xf32>
      %208 = arith.subf %207, %206 : vector<8x16xf32>
      %cst_83 = arith.constant 1.000000e+00 : f32
      %209 = vector.broadcast %cst_83 : f32 to vector<8x16xf32>
      %210 = arith.subf %192, %209 : vector<8x16xf32>
      %cst_84 = arith.constant 1.000000e+00 : f32
      %211 = vector.broadcast %cst_84 : f32 to vector<8x16xf32>
      %212 = arith.addf %192, %211 : vector<8x16xf32>
      %213 = arith.divf %210, %212 : vector<8x16xf32>
      %214 = arith.select %198, %213, %192 : vector<8x16xi1>, vector<8x16xf32>
      %215 = arith.select %194, %208, %214 : vector<8x16xi1>, vector<8x16xf32>
      %216 = arith.mulf %215, %215 : vector<8x16xf32>
      %cst_85 = arith.constant 0.0805374458 : f32
      %217 = vector.broadcast %cst_85 : f32 to vector<8x16xf32>
      %218 = arith.mulf %217, %216 : vector<8x16xf32>
      %cst_86 = arith.constant 0.138776854 : f32
      %219 = vector.broadcast %cst_86 : f32 to vector<8x16xf32>
      %220 = arith.subf %218, %219 : vector<8x16xf32>
      %221 = arith.mulf %220, %216 : vector<8x16xf32>
      %cst_87 = arith.constant 0.199777111 : f32
      %222 = vector.broadcast %cst_87 : f32 to vector<8x16xf32>
      %223 = arith.addf %221, %222 : vector<8x16xf32>
      %224 = arith.mulf %223, %216 : vector<8x16xf32>
      %cst_88 = arith.constant 0.333329499 : f32
      %225 = vector.broadcast %cst_88 : f32 to vector<8x16xf32>
      %226 = arith.subf %224, %225 : vector<8x16xf32>
      %227 = arith.mulf %226, %216 : vector<8x16xf32>
      %228 = arith.mulf %227, %215 : vector<8x16xf32>
      %229 = arith.addf %228, %215 : vector<8x16xf32>
      %230 = arith.addf %203, %229 : vector<8x16xf32>
      %cst_89 = arith.constant 9.99999974E-6 : f32
      %231 = vector.broadcast %cst_89 : f32 to vector<8x16xf32>
      %232 = arith.addf %182, %231 : vector<8x16xf32>
      %233 = tpu.reciprocal %232 {approx = true} : vector<8x16xf32> -> vector<8x16xf32>
      %234 = arith.mulf %179, %233 : vector<8x16xf32>
      %cst_90 = arith.constant 2.41421366 : f32
      %235 = vector.broadcast %cst_90 : f32 to vector<8x16xf32>
      %236 = arith.cmpf ogt, %234, %235 : vector<8x16xf32>
      %cst_91 = arith.constant dense<true> : vector<8x16xi1>
      %237 = arith.xori %236, %cst_91 : vector<8x16xi1>
      %cst_92 = arith.constant 0.414213568 : f32
      %238 = vector.broadcast %cst_92 : f32 to vector<8x16xf32>
      %239 = arith.cmpf ogt, %234, %238 : vector<8x16xf32>
      %240 = arith.andi %237, %239 : vector<8x16xi1>
      %cst_93 = arith.constant 0.785398185 : f32
      %cst_94 = arith.constant 0.000000e+00 : f32
      %241 = vector.broadcast %cst_93 : f32 to vector<8x16xf32>
      %242 = vector.broadcast %cst_94 : f32 to vector<8x16xf32>
      %243 = arith.select %240, %241, %242 : vector<8x16xi1>, vector<8x16xf32>
      %cst_95 = arith.constant 1.57079637 : f32
      %244 = vector.broadcast %cst_95 : f32 to vector<8x16xf32>
      %245 = arith.select %236, %244, %243 : vector<8x16xi1>, vector<8x16xf32>
      %cst_96 = arith.constant 1.000000e-30 : f32
      %246 = vector.broadcast %cst_96 : f32 to vector<8x16xf32>
      %247 = arith.maximumf %234, %246 : vector<8x16xf32>
      %248 = tpu.reciprocal %247 {approx = true} : vector<8x16xf32> -> vector<8x16xf32>
      %cst_97 = arith.constant 0.000000e+00 : f32
      %249 = vector.broadcast %cst_97 : f32 to vector<8x16xf32>
      %250 = arith.subf %249, %248 : vector<8x16xf32>
      %cst_98 = arith.constant 1.000000e+00 : f32
      %251 = vector.broadcast %cst_98 : f32 to vector<8x16xf32>
      %252 = arith.subf %234, %251 : vector<8x16xf32>
      %cst_99 = arith.constant 1.000000e+00 : f32
      %253 = vector.broadcast %cst_99 : f32 to vector<8x16xf32>
      %254 = arith.addf %234, %253 : vector<8x16xf32>
      %255 = arith.divf %252, %254 : vector<8x16xf32>
      %256 = arith.select %240, %255, %234 : vector<8x16xi1>, vector<8x16xf32>
      %257 = arith.select %236, %250, %256 : vector<8x16xi1>, vector<8x16xf32>
      %258 = arith.mulf %257, %257 : vector<8x16xf32>
      %cst_100 = arith.constant 0.0805374458 : f32
      %259 = vector.broadcast %cst_100 : f32 to vector<8x16xf32>
      %260 = arith.mulf %259, %258 : vector<8x16xf32>
      %cst_101 = arith.constant 0.138776854 : f32
      %261 = vector.broadcast %cst_101 : f32 to vector<8x16xf32>
      %262 = arith.subf %260, %261 : vector<8x16xf32>
      %263 = arith.mulf %262, %258 : vector<8x16xf32>
      %cst_102 = arith.constant 0.199777111 : f32
      %264 = vector.broadcast %cst_102 : f32 to vector<8x16xf32>
      %265 = arith.addf %263, %264 : vector<8x16xf32>
      %266 = arith.mulf %265, %258 : vector<8x16xf32>
      %cst_103 = arith.constant 0.333329499 : f32
      %267 = vector.broadcast %cst_103 : f32 to vector<8x16xf32>
      %268 = arith.subf %266, %267 : vector<8x16xf32>
      %269 = arith.mulf %268, %258 : vector<8x16xf32>
      %270 = arith.mulf %269, %257 : vector<8x16xf32>
      %271 = arith.addf %270, %257 : vector<8x16xf32>
      %272 = arith.addf %245, %271 : vector<8x16xf32>
      %273 = arith.subf %230, %272 : vector<8x16xf32>
      %cst_104 = arith.constant 0.405284733 : f32
      %274 = vector.broadcast %cst_104 : f32 to vector<8x16xf32>
      %275 = arith.mulf %274, %273 : vector<8x16xf32>
      %276 = arith.mulf %275, %273 : vector<8x16xf32>
      %cst_105 = arith.constant 5.000000e-01 : f32
      %277 = vector.broadcast %cst_105 : f32 to vector<8x16xf32>
      %278 = arith.cmpf ogt, %152, %277 : vector<8x16xf32>
      %279 = arith.extui %278 : vector<8x16xi1> to vector<8x16xi32>
      %280 = arith.sitofp %279 : vector<8x16xi32> to vector<8x16xf32>
      %281 = arith.mulf %280, %276 : vector<8x16xf32>
      %cst_106 = arith.constant 1.000000e+00 : f32
      %282 = vector.broadcast %cst_106 : f32 to vector<8x16xf32>
      %283 = arith.subf %282, %152 : vector<8x16xf32>
      %284 = arith.addf %283, %276 : vector<8x16xf32>
      %285 = tpu.reciprocal %284 {approx = true} : vector<8x16xf32> -> vector<8x16xf32>
      %286 = arith.mulf %281, %285 : vector<8x16xf32>
      %287 = arith.divf %176, %165 : vector<8x16xf32>
      %288 = arith.subf %152, %287 : vector<8x16xf32>
      %289 = arith.mulf %286, %276 : vector<8x16xf32>
      %290 = arith.subf %288, %289 : vector<8x16xf32>
      %cst_107 = arith.constant 1.000000e+00 : f32
      %291 = vector.broadcast %cst_107 : f32 to vector<8x16xf32>
      %292 = arith.subf %291, %290 : vector<8x16xf32>
      %293 = arith.mulf %292, %116 : vector<8x16xf32>
      %cst_108 = arith.constant 0.000000e+00 : f32
      %294 = vector.broadcast %cst_108 : f32 to vector<8x16xf32>
      %295 = arith.cmpf ogt, %116, %294 : vector<8x16xf32>
      %296 = arith.cmpf oeq, %293, %293 : vector<8x16xf32>
      %297 = arith.andi %295, %296 : vector<8x16xi1>
      %cst_109 = arith.constant 0.000000e+00 : f32
      %298 = vector.broadcast %cst_109 : f32 to vector<8x16xf32>
      %299 = arith.select %297, %293, %298 : vector<8x16xi1>, vector<8x16xf32>
      %300 = vector.shape_cast %299 : vector<8x16xf32> to vector<1x8x16xf32>
      %cst_110 = arith.constant dense<0.000000e+00> : vector<1xf32>
      %301 = vector.multi_reduction <add>, %300, %cst_110 [1, 2] : vector<1x8x16xf32> to vector<1xf32>
      %302 = vector.shape_cast %301 : vector<1xf32> to vector<1x1x1xf32>
      %303 = vector.extract %302[0, 0, 0] : f32 from vector<1x1x1xf32>
      %304 = arith.addf %cst_31, %303 : f32
      %c1_i32_111 = arith.constant 1 : i32
      %305 = tpu.iota {dimensions = array<i32: 0>} : vector<8x128xi32>
      %c0_i32_112 = arith.constant 0 : i32
      %306 = vector.broadcast %c0_i32_112 : i32 to vector<8x128xi32>
      %307 = arith.cmpi eq, %305, %306 : vector<8x128xi32>
      %c1_i32_113 = arith.constant 1 : i32
      %308 = vector.broadcast %c1_i32_113 : i32 to vector<8x128xi32>
      %309 = arith.cmpi eq, %305, %308 : vector<8x128xi32>
      %c2_i32 = arith.constant 2 : i32
      %310 = vector.broadcast %c2_i32 : i32 to vector<8x128xi32>
      %311 = arith.cmpi eq, %305, %310 : vector<8x128xi32>
      %c3_i32 = arith.constant 3 : i32
      %312 = vector.broadcast %c3_i32 : i32 to vector<8x128xi32>
      %313 = arith.cmpi eq, %305, %312 : vector<8x128xi32>
      %cst_114 = arith.constant 0.000000e+00 : f32
      %314 = vector.broadcast %66 : f32 to vector<8x128xf32>
      %315 = vector.broadcast %cst_114 : f32 to vector<8x128xf32>
      %316 = arith.select %313, %314, %315 : vector<8x128xi1>, vector<8x128xf32>
      %317 = vector.broadcast %304 : f32 to vector<8x128xf32>
      %318 = arith.select %311, %317, %316 : vector<8x128xi1>, vector<8x128xf32>
      %319 = vector.broadcast %60 : f32 to vector<8x128xf32>
      %320 = arith.select %309, %319, %318 : vector<8x128xi1>, vector<8x128xf32>
      %321 = vector.broadcast %53 : f32 to vector<8x128xf32>
      %322 = arith.select %307, %321, %320 : vector<8x128xi1>, vector<8x128xf32>
      %c0_115 = arith.constant 0 : index
      %c0_116 = arith.constant 0 : index
      %c0_117 = arith.constant 0 : index
      %c0_118 = arith.constant 0 : index
      %323 = vector.load %arg8[%c0_115, %c0_116, %c0_117, %c0_118] : memref<1x1x8x128xf32, #tpu.memory_space<vmem>>, vector<1x1x8x128xf32>
      %324 = vector.shape_cast %323 : vector<1x1x8x128xf32> to vector<8x128xf32>
      %325 = vector.shape_cast %322 : vector<8x128xf32> to vector<1x1x8x128xf32>
      tpu.vector_store %arg8[%c0_115, %c0_116, %c0_117, %c0_118], %325 {strides = array<i32>} : memref<1x1x8x128xf32, #tpu.memory_space<vmem>>, vector<1x1x8x128xf32>,
    } else {
    }
    %c0_i32_29 = arith.constant 0 : i32
    %78 = arith.cmpi eq, %74, %c0_i32_29 : i32
    %79 = arith.extui %78 : i1 to i32
    %c0_i32_30 = arith.constant 0 : i32
    %80 = arith.cmpi ne, %79, %c0_i32_30 : i32
    scf.if %80 {
      %81 = tpu.iota {dimensions = array<i32: 0>} : vector<8x128xi32>
      %c0_i32_31 = arith.constant 0 : i32
      %82 = vector.broadcast %c0_i32_31 : i32 to vector<8x128xi32>
      %83 = arith.cmpi eq, %81, %82 : vector<8x128xi32>
      %c1_i32_32 = arith.constant 1 : i32
      %84 = vector.broadcast %c1_i32_32 : i32 to vector<8x128xi32>
      %85 = arith.cmpi eq, %81, %84 : vector<8x128xi32>
      %c2_i32 = arith.constant 2 : i32
      %86 = vector.broadcast %c2_i32 : i32 to vector<8x128xi32>
      %87 = arith.cmpi eq, %81, %86 : vector<8x128xi32>
      %c3_i32 = arith.constant 3 : i32
      %88 = vector.broadcast %c3_i32 : i32 to vector<8x128xi32>
      %89 = arith.cmpi eq, %81, %88 : vector<8x128xi32>
      %cst_33 = arith.constant 0.000000e+00 : f32
      %90 = vector.broadcast %66 : f32 to vector<8x128xf32>
      %91 = vector.broadcast %cst_33 : f32 to vector<8x128xf32>
      %92 = arith.select %89, %90, %91 : vector<8x128xi1>, vector<8x128xf32>
      %cst_34 = arith.constant 0.000000e+00 : f32
      %93 = vector.broadcast %cst_34 : f32 to vector<8x128xf32>
      %94 = arith.select %87, %93, %92 : vector<8x128xi1>, vector<8x128xf32>
      %95 = vector.broadcast %60 : f32 to vector<8x128xf32>
      %96 = arith.select %85, %95, %94 : vector<8x128xi1>, vector<8x128xf32>
      %97 = vector.broadcast %53 : f32 to vector<8x128xf32>
      %98 = arith.select %83, %97, %96 : vector<8x128xi1>, vector<8x128xf32>
      %c0_35 = arith.constant 0 : index
      %c0_36 = arith.constant 0 : index
      %c0_37 = arith.constant 0 : index
      %c0_38 = arith.constant 0 : index
      %99 = vector.load %arg8[%c0_35, %c0_36, %c0_37, %c0_38] : memref<1x1x8x128xf32, #tpu.memory_space<vmem>>, vector<1x1x8x128xf32>
      %100 = vector.shape_cast %99 : vector<1x1x8x128xf32> to vector<8x128xf32>
      %101 = vector.shape_cast %98 : vector<8x128xf32> to vector<1x1x8x128xf32>
      tpu.vector_store %arg8[%c0_35, %c0_36, %c0_37, %c0_38], %101 {strides = array<i32>} : memref<1x1x8x128xf32, #tpu.memory_space<vmem>>, vector<1x1x8x128xf32>,
    } else {
    }
    return
  }
  func.func @transform_0(%arg0: i32, %arg1: i32, %arg2: memref<2x2xi32, #tpu.memory_space<smem>>) -> (i32, i32, i32, i32) {
    %c0_i32 = arith.constant 0 : i32
    %c0_i32_0 = arith.constant 0 : i32
    %c0_i32_1 = arith.constant 0 : i32
    return %arg0, %c0_i32, %arg1, %c0_i32_0 : i32, i32, i32, i32
  }
  func.func @transform_1(%arg0: i32, %arg1: i32, %arg2: memref<2x2xi32, #tpu.memory_space<smem>>) -> (i32, i32, i32, i32) {
    %c0_i32 = arith.constant 0 : i32
    %c0_i32_0 = arith.constant 0 : i32
    %c0_i32_1 = arith.constant 0 : i32
    return %arg0, %c0_i32, %arg1, %c0_i32_0 : i32, i32, i32, i32
  }
  func.func @transform_2(%arg0: i32, %arg1: i32, %arg2: memref<2x2xi32, #tpu.memory_space<smem>>) -> (i32, i32, i32, i32) {
    %c0_i32 = arith.constant 0 : i32
    %c0_i32_0 = arith.constant 0 : i32
    %c0_i32_1 = arith.constant 0 : i32
    return %arg0, %c0_i32, %arg1, %c0_i32_0 : i32, i32, i32, i32
  }
  func.func @transform_3(%arg0: i32, %arg1: i32, %arg2: memref<2x2xi32, #tpu.memory_space<smem>>) -> (i32, i32, i32, i32) {
    %c0_i32 = arith.constant 0 : i32
    %c0_i32_0 = arith.constant 0 : i32
    %c0_i32_1 = arith.constant 0 : i32
    return %arg0, %c0_i32, %arg1, %c0_i32_0 : i32, i32, i32, i32
  }
  func.func @transform_4(%arg0: i32, %arg1: i32, %arg2: memref<2x2xi32, #tpu.memory_space<smem>>) -> (i32, i32, i32) {
    %c0_i32 = arith.constant 0 : i32
    %c0_i32_0 = arith.constant 0 : i32
    return %arg0, %arg1, %c0_i32 : i32, i32, i32
  }
  func.func @transform_5(%arg0: i32, %arg1: i32, %arg2: memref<2x2xi32, #tpu.memory_space<smem>>) -> (i32, i32, i32, i32) {
    %c0_i32 = arith.constant 0 : i32
    %c0_i32_0 = arith.constant 0 : i32
    %c0_i32_1 = arith.constant 0 : i32
    return %arg0, %arg1, %c0_i32, %c0_i32_0 : i32, i32, i32, i32
  }
}

</mosaic_0001>

<bundles_post_ra>
// kernel: tpu_custom_call.1
= control target key start
LH: loop header
LB: loop body
LE: loop exit
PB: predicated region body
PF: predicated region fallthrough
CT: control target
= control target key end

     0   :  { %s1479_s21 = smov [#allocation3]   ;;  %s2017_s0 = inlined_call_operand.hbm [shape: s32[2,2], index: 0, kind: input, shape index: {}]   ;;  %s2018_s1 = inlined_call_operand.hbm [shape: f32[2,4,16,16], index: 1, kind: input, shape index: {}]   ;;  %s2019_s2 = inlined_call_operand.hbm [shape: f32[2,4,16,16], index: 2, kind: input, shape index: {}]   ;;  %s2020_s3 = inlined_call_operand.hbm [shape: f32[2,4,16,16], index: 3, kind: input, shape index: {}]   ;;  %s2021_s4 = inlined_call_operand.hbm [shape: f32[2,4,16,16], index: 4, kind: input, shape index: {}]   ;;  %s2022_s5 = inlined_call_operand.hbm [shape: f32[2,16,16], index: 5, kind: input, shape index: {}]   ;;  %s2023_s6 = inlined_call_operand.hbm [shape: f32[2,2,8,128], index: 6, kind: output, shape index: {}]  }
   0x1   :  { %2039 = sst [smem:[#allocation31_spill]] %s2019_s2 }
   0x2   :  { %2040 = sst [smem:[#allocation32_spill]] %s2021_s4 }
   0x3   :  { %2041 = sst [smem:[#allocation33_spill]] %s2023_s6 }
   0x4   :  { %12 = dma.hbm_to_smem %s2017_s0, 32, %s1479_s21, [#allocation2] }
   0x5   :  { %1429 = dma.done.wait [#allocation2], 32 }
   0x6   :  { %1430 = vsyncadd [#allocation2], 4294967264 }
   0x7   :  { %14 = sfence }
   0x8   :  { %15 = vsyncpa [#allocation5], 0 }
   0x9   :  { %17 = vsyncpa [#allocation5 + $0x1], 0 }
   0xa   :  { %18 = vsyncpa [#allocation8], 0 }
   0xb   :  { %20 = vsyncpa [#allocation8 + $0x1], 0 }
   0xc   :  { %21 = vsyncpa [#allocation11], 0 }
   0xd   :  { %23 = vsyncpa [#allocation11 + $0x1], 0 }
   0xe   :  { %24 = vsyncpa [#allocation6], 0 }
   0xf   :  { %26 = vsyncpa [#allocation6 + $0x1], 0  ;;  %s1530_s24 = smov 0   ;;  %s1532_s25 = smov 0  }
  0x10   :  { %s1534_s26 = smov 0   ;;  %s1536_s27 = smov 0  }
  0x11   :  { %s1538_s0 = smov 0   ;;  %s1540_s28 = smov 0  }
  0x12   :  { %s1542_s29 = smov 0   ;;  %s1544_s30 = smov 0  }
  0x13 LB: > { %2042 = sst [smem:[#allocation19_spill]] %s1449_s24  ;;  %s1571_s7 = sadd.s32 4294967295, %s1477_s30   ;;  %s1477_s30 = sphi %s1544_s30, %s32_s30   ;;  %s1473_s29 = sphi %s1542_s29, %s2089_s29   ;;  %s1469_s28 = sphi %s1540_s28, %s2088_s28   ;;  %s1465_s0 = sphi %s1538_s0, %s2087_s0   ;;  %s1461_s27 = sphi %s1536_s27, %s2086_s27   ;;  %s1457_s26 = sphi %s1534_s26, %s2081_s26   ;;  %s1453_s25 = sphi %s1532_s25, %s2085_s25   ;;  %s1449_s24 = sphi %s1530_s24, %s2084_s24  }
  0x14   : > { %2043 = sst [smem:[#allocation20_spill]] %s1457_s26  ;;  %s1017_s8 = sadd.s32 4294967294, %s1477_s30  }
  0x15   : > { %2044 = sst [smem:[#allocation21_spill]] %s1461_s27  ;;  %s41_s9 = sadd.s32 1, %s1469_s28 }
  0x16   : > { %2045 = sst [smem:[#allocation22_spill]] %s1465_s0  ;;  %s44_s10 = sadd.s32 1, %s1473_s29 }
  0x17   : > { %2046 = sst [smem:[#allocation23_spill]] %s1477_s30  ;;  %p42_p0 = scmp.ge.s32.totalorder %s41_s9, 2 }
  0x18   : > { %2047 = sst [smem:[#allocation24_spill]] %s1571_s7  ;;  %s53_s11 = sadd.s32 1, %s1457_s26 }
  0x19   : > { %p60_p1 = scmp.ne.s32.totalorder %s1457_s26, %s1453_s25  ;;  %p61_p2 = scmp.eq.s32.totalorder %s1477_s30, 0 }
  0x1a   : > { %s2091_s9 = smov (%p42_p0, %s41_s9), 0  ;;  %s2093_s10 = smov (!%p42_p0, %s44_s10), %s1473_s29 }
  0x1b   : > { %2048 = sst [smem:[#allocation25_spill]] %s2091_s9  ;;  %s49_s12 = ssub.s32 %s1469_s28, %s2091_s9 }
  0x1c   : > { %p1585_p3 = por %p61_p2, %p60_p1  ;;  %p46_p4 = scmp.ge.s32.totalorder %s2093_s10, 2 }
  0x1d   : > { %p66_p5 = scmp.ne.s32.totalorder %s1453_s25, %s1449_s24  ;;  %p67_p6 = scmp.eq.s32.totalorder %s1571_s7, 0 }
  0x1e   : > { %p204_p7 = scmp.eq.s32.totalorder %s1571_s7, 3  ;;  %s2095_s10 = smov (%p46_p4, %s2093_s10), 0 }
  0x1f   : > { %2050 = sst [smem:[#allocation26_spill]] %s2095_s10  ;;  %p1595_p8 = por %p67_p6, %p66_p5 }
  0x20   : > { %p1599_p9 = por %p204_p7, %p60_p1  ;;  %s48_s16 = ssub.s32 %s1473_s29, %s2095_s10 }
  0x21   : > { %s2051_s14 = scalar_select %p1595_p8, 1, 0 }
  0x22   : > { %s2053_s15 = scalar_select %p1599_p9, 1, 0 }
  0x23   : > { %2052 = sst [smem:[#allocation27_spill]] %s2051_s14  ;;  %p210_p10 = scmp.eq.s32.totalorder %s1017_s8, 3 }
  0x24   : > { %2054 = sst [smem:[#allocation28_spill]] %s2053_s15  ;;  %s50_s17 = sor.u32 %s49_s12, %s48_s16 }
  0x25   : > { %p51_p11 = scmp.eq.s32.totalorder %s50_s17, 0  ;;  %p1605_p12 = por %p210_p10, %p66_p5 }
  0x26   : > { %p1108_p13 = scmp.lt.s32.totalorder %s1477_s30, 4  ;;  %s1611_s19 = sand.u32 1, %s1457_s26  }
  0x27   : > { %s2055_s18 = scalar_select %p1605_p12, 1, 0 }
  0x28   : > { %s1614_s20 = scalar_select %p51_p11, %s1457_s26, %s53_s11  }
  0x29   : > { %2056 = sst [smem:[#allocation29_spill]] %s2055_s18  ;;  %s1617_s21 = sshll.u32 %s1611_s19, 5 }
  0x2a   : > { %2057 = sst [smem:[#allocation30_spill]] %s1614_s20  ;;  %s1021_s22 = sshll.u32 %s1473_s29, 3 }
  0x2b   : > { %s239_s23 = sadd.s32 %s1469_s28, %s1021_s22  ;;  %p1623_p0 = pnand %p1108_p13, %p1585_p3 }
  0x2c   : > { %s1627_s12 = sshll.u32 %s239_s23, 7  ;;  %s2026_s16 = sand.u32 1, %s1477_s30  }
  0x2d   : > { %s2059_s2 = sld [smem:[#allocation31_spill]]  ;;  %s256_s9 = scalar_lea.vmem [#allocation7], %s1617_s21 }
  0x2e   : > { %s264_s20 = sshll.u32 %s256_s9, 4  ;;  %p1035_p1 = scmp.ge.s32.totalorder %s1477_s30, 1  ;;  %s265_s20 = int_to_ptr.vmem [resolvable:$true] %s264_s20 }
  0x2f   : > { %s1638_s22 = scalar_lea.sflag [#allocation8], %s2026_s16  ;;  %p1642_p2 = pneg %p1623_p0 }
  0x30   : > { %s1244_s23 = scalar_lea.vmem %s265_s20, 512  ;;  %s1480_s10 = smov [#allocation7]  }
  0x31   : > { %p1245_p3 = scmp.ne.s32.totalorder %s265_s20, %s1244_s23  ;;  %s1249_s17 = sshll.u32 %s1480_s10, 4  ;;  %s1250_s17 = int_to_ptr.vmem [resolvable:$false] %s1249_s17 }
  0x32   : > { %s1251_s9 = scalar_lea.vmem %s1250_s17, 1024  ;;  %p1252_p6 = scmp.lt.s32.totalorder %s265_s20, %s1250_s17 }
  0x33   : > { %s263_s11 = scalar_lea.hbm %s2059_s2, %s1627_s12  ;;  %p1247_p4 = pnand %p1245_p3, %p1642_p2 }
  0x34   : > { %p1253_p7 = scmp.lt.s32.totalorder %s1251_s9, %s1244_s23 }
  0x35   : > { %p1248_p5 = pneg %p1247_p4 }
  0x36   : > { %p1254_p10 = por %p1253_p7, %p1252_p6 }
  0x38   : > { %p1255_p11 = pnand %p1254_p10, %p1248_p5 }
  0x3a   : > { %1258 = shalt.err (!%p1255_p11)
}
  0x3b   : > { %s1481_s16 = smov 256   ;;  %s1482_s2 = smov 128  }
  0x3c   : > { %s1483_s26 = smov 8   ;;  %p336_p13 = scmp.lt.s32.totalorder %s1477_s30, 5 }
  0x3d   : > { %1094 = dma.hbm_to_vmem [thread:$0]  (!%p1623_p0), %s263_s11, 512, %s265_s20, %s1638_s22, %s1481_s16, %s1482_s2, %s1483_s26  }
  0x3e   : > { %s2061_s4 = sld [smem:[#allocation32_spill]]  ;;  %p1661_p3 = pnand %p1035_p1, %p336_p13 }
  0x3f   : > { %s300_s18 = scalar_lea.vmem [#allocation10], %s1617_s21  ;;  %s2063_s6 = sand.u32 1, %s1477_s30  }
  0x40   : > { %s308_s24 = sshll.u32 %s300_s18, 4  ;;  %s1668_s15 = scalar_lea.sflag [#allocation11], %s2063_s6  ;;  %s309_s24 = int_to_ptr.vmem [resolvable:$true] %s308_s24 }
  0x41   : > { %s1272_s0 = scalar_lea.vmem %s309_s24, 512  ;;  %s1484_s20 = smov [#allocation10]  }
  0x42   : > { %p1273_p4 = scmp.ne.s32.totalorder %s309_s24, %s1272_s0  ;;  %s1277_s11 = sshll.u32 %s1484_s20, 4  ;;  %s1278_s11 = int_to_ptr.vmem [resolvable:$false] %s1277_s11 }
  0x43   : > { %s1279_s23 = scalar_lea.vmem %s1278_s11, 1024  ;;  %p1280_p7 = scmp.lt.s32.totalorder %s309_s24, %s1278_s11 }
  0x44   : > { %s307_s17 = scalar_lea.hbm %s2061_s4, %s1627_s12  ;;  %p1275_p5 = pnand %p1273_p4, %p1642_p2 }
  0x45   : > { %p1281_p1 = scmp.lt.s32.totalorder %s1279_s23, %s1272_s0 }
  0x46   : > { %p1276_p6 = pneg %p1275_p5 }
  0x47   : > { %p1282_p10 = por %p1281_p1, %p1280_p7 }
  0x49   : > { %p1283_p11 = pnand %p1282_p10, %p1276_p6 }
  0x4b   : > { %1286 = shalt.err (!%p1283_p11)
}
  0x4c   : > { %1100 = dma.hbm_to_vmem [thread:$0]  (!%p1623_p0), %s307_s17, 512, %s309_s24, %s1668_s15, %s1481_s16, %s1482_s2, %s1483_s26  }
  0x4d   : > { %s241_s10 = scalar_lea.hbm %s2018_s1, %s1627_s12  ;;  %s234_s0 = scalar_lea.vmem [#allocation4], %s1617_s21 }
  0x4e   : > { %s242_s20 = sshll.u32 %s234_s0, 4  ;;  %s285_s4 = scalar_lea.hbm %s2020_s3, %s1627_s12  ;;  %s243_s20 = int_to_ptr.vmem [resolvable:$true] %s242_s20 }
  0x4f   : > { %s231_s30 = scalar_lea.sflag [#allocation5], %s1611_s19  ;;  %s1300_s27 = scalar_lea.vmem %s243_s20, 512 }
  0x50   : > { %p1301_p13 = scmp.ne.s32.totalorder %s243_s20, %s1300_s27  ;;  %s1485_s7 = smov [#allocation4]  }
  0x51   : > { %s1305_s14 = sshll.u32 %s1485_s7, 4  ;;  %s1306_s14 = int_to_ptr.vmem [resolvable:$false] %s1305_s14 }
  0x52   : > { %p1303_p4 = pnand %p1301_p13, %p1642_p2  ;;  %s1307_s24 = scalar_lea.vmem %s1306_s14, 1024 }
  0x53   : > { %p1308_p6 = scmp.lt.s32.totalorder %s243_s20, %s1306_s14  ;;  %p1309_p7 = scmp.lt.s32.totalorder %s1307_s24, %s1300_s27 }
  0x54   : > { %p1304_p5 = pneg %p1303_p4 }
  0x55   : > { %p1310_p1 = por %p1309_p7, %p1308_p6 }
  0x57   : > { %p1311_p10 = pnand %p1310_p1, %p1304_p5 }
  0x59   : > { %1314 = shalt.err (!%p1311_p10)
}
  0x5a   : > { %1091 = dma.hbm_to_vmem [thread:$0]  (!%p1623_p0), %s241_s10, 512, %s243_s20, %s231_s30, %s1481_s16, %s1482_s2, %s1483_s26  }
  0x5b   : > { %s278_s17 = scalar_lea.vmem [#allocation9], %s1617_s21  ;;  %s1032_s18 = sshll.u32 %s1611_s19, 3 }
  0x5c   : > { %s286_s6 = sshll.u32 %s278_s17, 4  ;;  %s1486_s27 = smov [#allocation9]   ;;  %s287_s6 = int_to_ptr.vmem [resolvable:$true] %s286_s6 }
  0x5d   : > { %s1328_s7 = scalar_lea.vmem %s287_s6, 512  ;;  %s1333_s14 = sshll.u32 %s1486_s27, 4  ;;  %s1334_s14 = int_to_ptr.vmem [resolvable:$false] %s1333_s14 }
  0x5e   : > { %p1329_p11 = scmp.ne.s32.totalorder %s287_s6, %s1328_s7  ;;  %s1335_s0 = scalar_lea.vmem %s1334_s14, 1024 }
  0x5f   : > { %p1336_p5 = scmp.lt.s32.totalorder %s287_s6, %s1334_s14  ;;  %p1337_p6 = scmp.lt.s32.totalorder %s1335_s0, %s1328_s7 }
  0x60   : > { %p1331_p13 = pnand %p1329_p11, %p1642_p2 }
  0x61   : > { %p1338_p7 = por %p1337_p6, %p1336_p5 }
  0x62   : > { %p1332_p4 = pneg %p1331_p13 }
  0x64   : > { %p1339_p1 = pnand %p1338_p7, %p1332_p4 }
  0x66   : > { %1342 = shalt.err (!%p1339_p1)
}
  0x67   : > { %1097 = dma.hbm_to_vmem [thread:$0]  (!%p1623_p0), %s285_s4, 512, %s287_s6, %s1638_s22, %s1481_s16, %s1482_s2, %s1483_s26  }
  0x68   : > { %s1033_s21 = sshll.u32 %s1473_s29, 1  ;;  %s322_s10 = scalar_lea.vmem [#allocation12], %s1032_s18 }
  0x69   : > { %s331_s20 = sshll.u32 %s322_s10, 4  ;;  %s327_s11 = sadd.s32 %s1469_s28, %s1033_s21  ;;  %s332_s20 = int_to_ptr.vmem [resolvable:$true] %s331_s20 }
  0x6a   : > { %s1034_s23 = sshll.u32 %s327_s11, 7  ;;  %s1356_s27 = scalar_lea.vmem %s332_s20, 128 }
  0x6b   : > { %s329_s7 = scalar_lea.hbm %s2022_s5, %s1034_s23  ;;  %p1357_p10 = scmp.ne.s32.totalorder %s332_s20, %s1356_s27 }
  0x6c   : > { %s1487_s12 = smov [#allocation12]  }
  0x6d   : > { %p1359_p11 = pnand %p1357_p10, %p1642_p2  ;;  %s1361_s14 = sshll.u32 %s1487_s12, 4  ;;  %s1362_s14 = int_to_ptr.vmem [resolvable:$false] %s1361_s14 }
  0x6e   : > { %s1363_s0 = scalar_lea.vmem %s1362_s14, 256  ;;  %p1364_p4 = scmp.lt.s32.totalorder %s332_s20, %s1362_s14 }
  0x6f   : > { %p1360_p13 = pneg %p1359_p11  ;;  %p1365_p5 = scmp.lt.s32.totalorder %s1363_s0, %s1356_s27 }
  0x71   : > { %p1366_p6 = por %p1365_p5, %p1364_p4 }
  0x73   : > { %p1367_p7 = pnand %p1366_p6, %p1360_p13 }
  0x75   : > { %1370 = shalt.err (!%p1367_p7)
}
  0x76   : > { %1103 = dma.hbm_to_vmem [thread:$0]  (!%p1623_p0), %s329_s7, 128, %s332_s20, %s1668_s15  }
  0x77   : > { %340 = sbr.rel (%p1661_p3) target bundleno = 759 (0x2f7), region = 40  ;;  %s1723_s4 = sand.u32 (!%p1661_p3), 1, %s1453_s25  }
  0x78   : > { %s1036_s26 = sshll.u32 (!%p1661_p3), %s1723_s4, 5  ;;  %s343_s16 = scalar_lea.sflag (!%p1661_p3), [#allocation5], %s1723_s4 }
  0x79   : > { %s346_s22 = scalar_lea.vmem (!%p1661_p3), [#allocation4], %s1036_s26 }
  0x7c   : > { %1432 = dma.done.wait (%p1595_p8), %s343_s16, 512  }
  0x7d   : > { %1434 = vsyncadd (%p1595_p8), %s343_s16, 4294966784  ;;  %s2065_s8 = sld [smem:[#allocation24_spill]]  ;;  %s1732_s9 = scalar_lea.vmem [#allocation7], %s1036_s26 }
  0x83   : > { %s351_s15 = sand.u32 1, %s2065_s8  }
  0x84   : > { %s352_s13 = scalar_lea.sflag [#allocation8], %s351_s15 }
  0x85   : > { %1436 = dma.done.wait (%p1595_p8), %s352_s13, 1024  }
  0x86   : > { %1438 = vsyncadd (%p1595_p8), %s352_s13, 4294966272  ;;  %s1738_s6 = scalar_lea.vmem [#allocation9], %s1036_s26  ;;  %s370_s18 = scalar_lea.sflag [#allocation11], %s351_s15 }
  0x87   : > { %s1740_s30 = scalar_lea.vmem [#allocation10], %s1036_s26 }
  0x88   : > { %1440 = dma.done.wait (%p1595_p8), %s370_s18, 640  }
  0x89   : > { %1442 = vsyncadd (%p1595_p8), %s370_s18, 4294966656  ;;  %s2066_s19 = sld [smem:[#allocation21_spill]]  ;;  %s1040_s23 = sshll.u32 %s1723_s4, 3  ;;  %vm545_vm0 = vcmask 130048   ;;  %v1758_v2 = vld [vmem:[%s346_s22] sm:$0xff]  ;;  %v1760_v3 = vld [vmem:[%s346_s22 + $0x8] sm:$0xff] }
  0x8a   : > { %s2067_s21 = sld [smem:[#allocation22_spill]]  ;;  %s1754_s27 = scalar_lea.vmem [#allocation12], %s1040_s23  ;;  %v1762_v4 = vld [vmem:[%s346_s22 + $0x10] sm:$0xff]  ;;  %v1764_v5 = vld [vmem:[%s346_s22 + $0x18] sm:$0xff]  ;;  %v453_v6 = vsub.f32 0.0, %v1758_v2  ;;  %v454_v7 = vsub.f32 0.0, %v1760_v3 }
  0x8b   : > { %v588_v0 = vld [vmem:[%s1754_s27] sm:$0xff]  ;;  %v455_v8 = vsub.f32 0.0, %v1762_v4  ;;  %v456_v9 = vsub.f32 0.0, %v1764_v5  ;;  %v1783_v24 = vld [vmem:[%s1732_s9 + $0x10] sm:$0xff]  ;;  %v1786_v25 = vld [vmem:[%s1732_s9 + $0x18] sm:$0xff]  ;;  %v1488_v33 = vmov 0.0  }
  0x8c   : > { %v589_v1 = vsel %vm545_vm0, %v588_v0, 0.0  ;;  %v457_v10 = vmul.f32 1.442695, %v453_v6  ;;  %v459_v11 = vmul.f32 1.442695, %v454_v7  ;;  %v1777_v22 = vld [vmem:[%s1732_s9] sm:$0xff] }
  0x8d   : > { %590 = vadd.xlane.f32.xlu1 %v589_v1  ;;  %v461_v12 = vmul.f32 1.442695, %v455_v8  ;;  %v463_v13 = vmul.f32 1.442695, %v456_v9  ;;  %v1780_v23 = vld [vmem:[%s1732_s9 + $0x8] sm:$0xff]  ;;  %v441_v26 = vsub.f32 1.0, %v1777_v22 }
  0x8e   : > { %1181 = vpow2.f32 %v457_v10  ;;  %v442_v27 = vsub.f32 1.0, %v1780_v23  ;;  %v443_v28 = vsub.f32 1.0, %v1783_v24  ;;  %v444_v29 = vsub.f32 1.0, %v1786_v25  ;;  %s1842_s2 = scalar_lea.vmem [#allocation13], %s1040_s23 }
  0x8f   : > { %s605_s10 = sshra.s32 %s2066_s19, 7  ;;  %s610_s20 = sand.u32 127, %s2066_s19  ;;  %1183 = vpow2.f32 %v459_v11  ;;  %vm437_vm1 = vcmp.eq.f32.partialorder %v1777_v22, 1.0  ;;  %vm438_vm2 = vcmp.eq.f32.partialorder %v1780_v23, 1.0  ;;  %v445_v37 = vmul.f32 %v441_v26, %v441_v26 }
  0x90   : > { %s607_s11 = sadd.s32 %s2067_s21, %s605_s10  ;;  %1185 = vpow2.f32 %v461_v12  ;;  %v1042_v34 = vsel %vm437_vm1, 1.0, %v1488_v33  ;;  %v1043_v35 = vsel %vm438_vm2, 1.0, %v1488_v33  ;;  %v446_v38 = vmul.f32 %v442_v27, %v442_v27 }
  0x91   : > { %s1046_s24 = sshll.u32 %s607_s11, 7  ;;  %1187 = vpow2.f32 %v463_v13  ;;  %v447_v41 = vmul.f32 %v443_v28, %v443_v28  ;;  %v448_v42 = vmul.f32 %v444_v29, %v444_v29  ;;  %v1801_v48 = vsel %vm545_vm0, %v1042_v34, 0.0 }
  0x92   : > { %s611_s17 = sadd.s32 %s1046_s24, %s610_s20  ;;  %v1804_v49 = vsel %vm545_vm0, %v1043_v35, 0.0  ;;  %vm439_vm3 = vcmp.eq.f32.partialorder %v1783_v24, 1.0  ;;  %v449_v11 = vmul.f32 %v445_v37, %v445_v37  ;;  %vm440_vm4 = vcmp.eq.f32.partialorder %v1786_v25, 1.0 }
  0x93   : > { %s1750_s7 = sld [smem:[#allocation3 + %s611_s17]]  ;;  %v452_v5 = vmul.f32 %v448_v42, %v448_v42 }
  0x99   : > { %p1047_p8 = scmp.le.s32.totalorder %s1750_s7, 0 }
  0x9a   : > { %s2068_s26 = sld [smem:[#allocation21_spill]] (!%p1047_p8) }
  0x9b   : > { %v1182_v14 = vpop.eup %1181 }
  0x9c   : > { %v1184_v15 = vpop.eup %1183  ;;  %v465_v16 = vadd.f32 1.0, %v1182_v14 }
  0x9d   : > { %v1186_v17 = vpop.eup %1185  ;;  %v466_v18 = vadd.f32 1.0, %v1184_v15 }
  0x9e   : > { %v1188_v19 = vpop.eup %1187  ;;  %v467_v20 = vadd.f32 1.0, %v1186_v17  ;;  %1189 = vlog2.f32 %v465_v16  ;;  %v451_v17 = vmul.f32 %v447_v41, %v447_v41 }
  0x9f   : > { %v468_v21 = vadd.f32 1.0, %v1188_v19  ;;  %1191 = vlog2.f32 %v466_v18 }
  0xa0   : > { %1193 = vlog2.f32 %v467_v20  ;;  %s1048_s16 = sshll.u32 (!%p1047_p8), %s2068_s26, 3 }
  0xa1   : > { %1195 = vlog2.f32 %v468_v21 }
  0xa2   : > { %1197 = vrcp.f32 %v465_v16 }
  0xa3   : > { %1199 = vrcp.f32 %v466_v18 }
  0xa4   : > { %1201 = vrcp.f32 %v467_v20 }
  0xa5   : > { %1203 = vrcp.f32 %v468_v21 }
  0xab   : > { %v1190_v30 = vpop.eup %1189 }
  0xac   : > { %v1192_v31 = vpop.eup %1191  ;;  %v470_v32 = vmul.f32 0.6931472, %v1190_v30 }
  0xad   : > { %v1194_v36 = vpop.eup %1193  ;;  %v472_v39 = vmul.f32 0.6931472, %v1192_v31 }
  0xae   : > { %v1196_v40 = vpop.eup %1195  ;;  %v474_v43 = vmul.f32 0.6931472, %v1194_v36  ;;  %v493_v44 = vsub.f32 0.0, %v470_v32  ;;  %v505_v54 = vsub.f32 %v453_v6, %v470_v32 }
  0xaf   : > { %v1198_v45 = vpop.eup %1197  ;;  %v476_v46 = vmul.f32 0.6931472, %v1196_v40  ;;  %v494_v47 = vsub.f32 0.0, %v472_v39  ;;  %v506_v59 = vsub.f32 %v454_v7, %v472_v39  ;;  %v450_v7 = vmul.f32 %v446_v38, %v446_v38 }
  0xb0   : > { %v1200_v50 = vpop.eup %1199  ;;  %v485_v51 = vmax.f32 %v1198_v45, 1e-06  ;;  %v495_v52 = vsub.f32 0.0, %v474_v43  ;;  %v497_v53 = vmax.f32 %v493_v44, -13.815511  ;;  %v507_v0 = vsub.f32 %v455_v8, %v474_v43 }
  0xb1   : > { %v1202_v55 = vpop.eup %1201  ;;  %v486_v56 = vmax.f32 %v1200_v50, 1e-06  ;;  %v496_v57 = vsub.f32 0.0, %v476_v46  ;;  %v498_v58 = vmax.f32 %v494_v47, -13.815511  ;;  %v508_v6 = vsub.f32 %v456_v9, %v476_v46 }
  0xb2   : > { %v1204_v60 = vpop.eup %1203  ;;  %v487_v61 = vmax.f32 %v1202_v55, 1e-06  ;;  %v489_v62 = vmin.f32 %v485_v51, 0.999999  ;;  %v499_v63 = vmax.f32 %v495_v52, -13.815511  ;;  %v573_v55 = vadd.f32 %v1804_v49, %v1801_v48 }
  0xb3   : > { %v488_v1 = vmax.f32 %v1204_v60, 1e-06  ;;  %v490_v2 = vmin.f32 %v486_v56, 0.999999  ;;  %v500_v10 = vmax.f32 %v496_v57, -13.815511 }
  0xb4   : > { %v491_v12 = vmin.f32 %v487_v61, 0.999999  ;;  %v501_v13 = vmin.f32 %v497_v53, -1.0000005e-06  ;;  %v502_v3 = vmin.f32 %v498_v58, -1.0000005e-06 }
  0xb5   : > { %v492_v14 = vmin.f32 %v488_v1, 0.999999  ;;  %v503_v15 = vmin.f32 %v499_v63, -1.0000005e-06  ;;  %v504_v16 = vmin.f32 %v500_v10, -1.0000005e-06 }
  0xb6   : > { %v509_v18 = vmax.f32 %v505_v54, -13.815511  ;;  %v510_v4 = vmax.f32 %v506_v59, -13.815511  ;;  %v511_v8 = vmax.f32 %v507_v0, -13.815511 }
  0xb7   : > { %v512_v19 = vmax.f32 %v508_v6, -13.815511  ;;  %v517_v20 = vsub.f32 1.0, %v489_v62  ;;  %v518_v21 = vsub.f32 1.0, %v490_v2  ;;  %v519_v26 = vsub.f32 1.0, %v491_v12 }
  0xb8   : > { %v513_v9 = vmin.f32 %v509_v18, -1.0000005e-06  ;;  %v514_v27 = vmin.f32 %v510_v4, -1.0000005e-06  ;;  %v515_v28 = vmin.f32 %v511_v8, -1.0000005e-06 }
  0xb9   : > { %v516_v29 = vmin.f32 %v512_v19, -1.0000005e-06  ;;  %v520_v30 = vsub.f32 1.0, %v492_v14  ;;  %v521_v31 = vmul.f32 %v517_v20, %v501_v13  ;;  %v522_v32 = vmul.f32 %v518_v21, %v502_v3 }
  0xba   : > { %v523_v34 = vmul.f32 %v519_v26, %v503_v15  ;;  %v529_v35 = vmul.f32 %v513_v9, %v489_v62  ;;  %v530_v36 = vmul.f32 %v514_v27, %v490_v2  ;;  %v531_v37 = vmul.f32 %v515_v28, %v491_v12 }
  0xbb   : > { %v524_v38 = vmul.f32 %v520_v30, %v504_v16  ;;  %v525_v39 = vmul.f32 %v521_v31, %v517_v20  ;;  %v526_v40 = vmul.f32 %v522_v32, %v518_v21  ;;  %v532_v41 = vmul.f32 %v516_v29, %v492_v14 }
  0xbc   : > { %v527_v43 = vmul.f32 %v523_v34, %v519_v26  ;;  %v533_v44 = vmul.f32 %v529_v35, %v489_v62  ;;  %v534_v45 = vmul.f32 %v530_v36, %v490_v2  ;;  %v535_v46 = vmul.f32 %v531_v37, %v491_v12 }
  0xbd   : > { %v528_v42 = vmul.f32 %v524_v38, %v520_v30  ;;  %v536_v47 = vmul.f32 %v532_v41, %v492_v14  ;;  %v1044_v50 = vsel %vm439_vm3, 1.0, %v1488_v33  ;;  %v1045_v48 = vsel %vm440_vm4, 1.0, %v1488_v33 }
  0xbe   : > { %v537_v51 = vmul.f32 %v533_v44, %v449_v11  ;;  %v538_v52 = vmul.f32 %v534_v45, %v450_v7  ;;  %v539_v53 = vmul.f32 %v535_v46, %v451_v17  ;;  %v574_v59 = vsel %vm545_vm0, %v1044_v50, 0.0 }
  0xbf   : > { %v540_v54 = vmul.f32 %v536_v47, %v452_v5  ;;  %v575_v23 = vadd.f32 %v574_v59, %v573_v55  ;;  %v576_v0 = vsel %vm545_vm0, %v1045_v48, 0.0  ;;  %v599_v2 = vlaneseq }
  0xc0   : > { %v541_v56 = vsel %vm437_vm1, %v525_v39, %v537_v51  ;;  %v542_v57 = vsel %vm438_vm2, %v526_v40, %v538_v52  ;;  %v543_v58 = vsel %vm439_vm3, %v527_v43, %v539_v53 }
  0xc1   : > { %v544_v60 = vsel %vm440_vm4, %v528_v42, %v540_v54  ;;  %v546_v25 = vsel %vm545_vm0, %v541_v56, 0.0  ;;  %v547_v61 = vsel %vm545_vm0, %v542_v57, 0.0  ;;  %v549_v62 = vsel %vm545_vm0, %v543_v58, 0.0 }
  0xc2   : > { %v548_v63 = vadd.f32 %v547_v61, %v546_v25  ;;  %v551_v22 = vsel %vm545_vm0, %v544_v60, 0.0  ;;  %v577_v1 = vadd.f32 %v576_v0, %v575_v23  ;;  %v600_v10 = vand.u32 127, %v599_v2 }
  0xc3   : > { %v1832_v12 = vshrl.u32 %v599_v2, 7 }
  0xc4   : > { %v550_v49 = vadd.f32 %v549_v62, %v548_v63  ;;  %v601_v6 = vmul.u32 4, %v600_v10 }
  0xc6   : > { %v552_v24 = vadd.f32 %v551_v22, %v550_v49  ;;  %v602_v11 = vcvt.s32.f32 %v601_v6 }
  0xc8   : > { %553 = vadd.xlane.f32.xlu0 %v552_v24 }
  0xcc   : > { %578 = vadd.xlane.f32.xlu0 %v577_v1 }
 0x116   : > { %v591_v13 = vpop.xlane.xlu1 %590 }
 0x117   : > { %v592_v3 = vrot.slane %v591_v13, 4 }
 0x119   : > { %v593_v7 = vadd.f32 %v592_v3, %v591_v13 }
 0x11b   : > { %v594_v16 = vrot.slane %v593_v7, 2 }
 0x11d   : > { %v595_v20 = vadd.f32 %v594_v16, %v593_v7 }
 0x11f   : > { %v596_v27 = vrot.slane %v595_v20, 1 }
 0x121   : > { %v597_v30 = vadd.f32 %v596_v27, %v595_v20 }
 0x151   : > { %v554_v33 = vpop.xlane.xlu0 %553 }
 0x152   : > { %v555_v14 = vrot.slane %v554_v33, 4 }
 0x154   : > { %v556_v15 = vadd.f32 %v555_v14, %v554_v33 }
 0x155   : > { %v579_v17 = vpop.xlane.xlu0 %578 }
 0x156   : > { %v557_v18 = vrot.slane %v556_v15, 2  ;;  %v580_v4 = vrot.slane %v579_v17, 4 }
 0x158   : > { %v581_v8 = vadd.f32 %v580_v4, %v579_v17  ;;  %v558_v19 = vadd.f32 %v557_v18, %v556_v15 }
 0x15a   : > { %v582_v21 = vrot.slane %v581_v8, 2  ;;  %v559_v26 = vrot.slane %v558_v19, 1 }
 0x15c   : > { %v583_v5 = vadd.f32 %v582_v21, %v581_v8  ;;  %v560_v9 = vadd.f32 %v559_v26, %v558_v19 }
 0x15e   : > { %1068 = vpush %v560_v9  ;;  %v584_v28 = vrot.slane %v583_v5, 1 }
 0x160   : > { %v585_v29 = vadd.f32 %v584_v28, %v583_v5 }
 0x162   : > { %1070 = vpush %v585_v29 }
 0x163   : > { %1072 = vpush %v597_v30 }
 0x18f   : > { %s1834_s12 = spop %1068 }
 0x190   : > { %616 = sbr.rel (%p1047_p8) target bundleno = 720 (0x2d0), region = 64 }
 0x193   : > { %s1836_s14 = spop %1070 }
 0x194   : > { %s1838_s0 = spop %1072 }
 0x195   : > { %v619_v31 = vstv %s1048_s16  ;;  %v1848_v34 = vld [vmem:[%s1740_s30 + $0x8] sm:$0xff]  ;;  %v1851_v35 = vld [vmem:[%s1740_s30 + $0x18] sm:$0xff]  ;;  %v623_v53 = vld [vmem:[%s1738_s6] sm:$0xff]  ;;  %vm1489_vm7 = vmmov 1   ;;  %vm789_vm3 = vcmp.eq.s32.totalorder %v1832_v12, 3  ;;  %vm788_vm4 = vcmp.eq.s32.totalorder %v1832_v12, 2 }
 0x196   : > { %v620_v32 = vadd.s32 %v619_v31, %v1832_v12  ;;  %v1049_v37 = vld [vmem:[%s1738_s6 + $0x8] sm:$0xff]  ;;  %v1051_v38 = vld [vmem:[%s1738_s6 + $0x18] sm:$0xff]  ;;  %v663_v39 = vsub.f32 %v1851_v35, %v1848_v34  ;;  %v685_v41 = vadd.f32 %v1851_v35, %v1848_v34  ;;  %v1050_v54 = vld [vmem:[%s1738_s6 + $0x10] sm:$0xff]  ;;  %v1877_v57 = vsub.f32 %v602_v11, %v623_v53 }
 0x197   : > { %v1872_v55 = vld [vmem:[%s1740_s30] sm:$0xff]  ;;  %v1875_v56 = vld [vmem:[%s1740_s30 + $0x10] sm:$0xff]  ;;  %v1879_v58 = vadd.f32 %v1050_v54, %v602_v11 }
 0x198   : > { %v621_v36 = vmul.u32 4, %v620_v32  ;;  %v694_v45 = vmax.f32 %v663_v39, 0.0  ;;  %v661_v59 = vsub.f32 %v1875_v56, %v1872_v55  ;;  %v645_v0 = vmax.f32 %v1877_v57, %v1872_v55 }
 0x199   : > { %v656_v60 = vsub.f32 %v1879_v58, %v1877_v57  ;;  %v647_v24 = vmin.f32 %v1879_v58, %v1875_v56  ;;  %v664_v33 = vadd.f32 1.0, %v663_v39  ;;  %v670_v53 = vmax.f32 %v1879_v58, %v1875_v56 }
 0x19a   : > { %v622_v40 = vcvt.s32.f32 %v621_v36  ;;  %v695_v50 = vadd.f32 1e-05, %v694_v45  ;;  %v693_v25 = vmax.f32 %v661_v59, 0.0  ;;  %v662_v7 = vadd.f32 1.0, %v661_v59 }
 0x19b   : > { %v691_v61 = vmax.f32 %v656_v60, 0.0  ;;  %v649_v11 = vsub.f32 %v647_v24, %v645_v0  ;;  %v657_v15 = vadd.f32 1.0, %v656_v60  ;;  %v671_v54 = vmin.f32 %v1877_v57, %v1872_v55 }
 0x19c   : > { %v1859_v43 = vsub.f32 %v622_v40, %v1049_v37  ;;  %v1861_v44 = vadd.f32 %v1051_v38, %v622_v40  ;;  %1205 = vrcp.f32 %v695_v50  ;;  %v665_v4 = vmul.f32 %v664_v33, %v662_v7 }
 0x19d   : > { %v650_v3 = vadd.f32 1.0, %v649_v11  ;;  %v1490_v11 = vmov 0.0  }
 0x19e   : > { %v658_v46 = vsub.f32 %v1861_v44, %v1859_v43  ;;  %v684_v42 = vadd.f32 %v1861_v44, %v1859_v43  ;;  %v646_v2 = vmax.f32 %v1859_v43, %v1848_v34  ;;  %v648_v10 = vmin.f32 %v1861_v44, %v1851_v35 }
 0x19f   : > { %v651_v18 = vmax.f32 %v650_v3, 0.0  ;;  %v674_v59 = vmax.f32 %v1861_v44, %v1851_v35  ;;  %v675_v60 = vmin.f32 %v1859_v43, %v1848_v34 }
 0x1a0   : > { %v692_v47 = vmax.f32 %v658_v46, 0.0  ;;  %v1867_v51 = vsub.f32 %v684_v42, %v685_v41  ;;  %v652_v13 = vsub.f32 %v648_v10, %v646_v2  ;;  %v659_v16 = vadd.f32 1.0, %v658_v46 }
 0x1a2   : > { %v724_v52 = vadd.f32 1e-05, %v692_v47  ;;  %v653_v14 = vadd.f32 1.0, %v652_v13  ;;  %v660_v20 = vmul.f32 %v659_v16, %v657_v15 }
 0x1a4   : > { %1207 = vrcp.f32 %v724_v52  ;;  %v654_v19 = vmax.f32 %v653_v14, 0.0  ;;  %v666_v36 = vadd.f32 %v665_v4, %v660_v20 }
 0x1a6   : > { %v655_v32 = vmul.f32 %v654_v19, %v651_v18  ;;  %v681_v19 = vadd.f32 %v1879_v58, %v1877_v57 }
 0x1a8   : > { %v667_v46 = vsub.f32 %v666_v36, %v655_v32 }
 0x1a9   : > { %v1206_v62 = vpop.eup %1205 }
 0x1aa   : > { %v1885_v63 = vmul.f32 %v1206_v62, %v693_v25 }
 0x1ac   : > { %v704_v22 = vmax.f32 %v1885_v63, 1e-30  ;;  %v708_v23 = vadd.f32 1.0, %v1885_v63  ;;  %vm698_vm5 = vcmp.gt.f32.partialorder %v1885_v63, 2.4142137  ;;  %v1055_v17 = vadd.f32 -1.0, %v1885_v63 }
 0x1ad   : > { %vm699_vm8 = vmxor %vm698_vm5, %vm1489_vm7  ;;  %vm700_vm9 = vcmp.gt.f32.partialorder %v1885_v63, 0.41421357 }
 0x1ae   : > { %1209 = vrcp.f32 %v704_v22  ;;  %vm1911_vm12 = vmand %vm699_vm8, %vm700_vm9  ;;  %v672_v22 = vsub.f32 %v670_v53, %v671_v54 }
 0x1af   : > { %1211 = vrcp.f32 %v708_v23  ;;  %v676_v23 = vsub.f32 %v674_v59, %v675_v60  ;;  %v702_v35 = vsel %vm1911_vm12, 0.7853982, %v1490_v11 }
 0x1b0   : > { %v673_v10 = vmax.f32 %v672_v22, 0.0  ;;  %v703_v7 = vsel %vm698_vm5, 1.5707964, %v702_v35 }
 0x1b1   : > { %v1208_v48 = vpop.eup %1207 }
 0x1b2   : > { %v1888_v49 = vmul.f32 %v1208_v48, %v691_v61  ;;  %v678_v33 = vmul.f32 %v673_v10, %v673_v10 }
 0x1b4   : > { %v733_v1 = vmax.f32 %v1888_v49, 1e-30  ;;  %v737_v6 = vadd.f32 1.0, %v1888_v49  ;;  %vm727_vm6 = vcmp.gt.f32.partialorder %v1888_v49, 2.4142137  ;;  %v1058_v21 = vadd.f32 -1.0, %v1888_v49 }
 0x1b5   : > { %vm728_vm10 = vmxor %vm727_vm6, %vm1489_vm7  ;;  %vm729_vm11 = vcmp.gt.f32.partialorder %v1888_v49, 0.41421357 }
 0x1b6   : > { %1213 = vrcp.f32 %v733_v1  ;;  %vm1915_vm13 = vmand %vm728_vm10, %vm729_vm11 }
 0x1b7   : > { %1215 = vrcp.f32 %v737_v6  ;;  %v677_v6 = vmax.f32 %v676_v23, 0.0  ;;  %v731_v34 = vsel %vm1915_vm13, 0.7853982, %v1490_v11  ;;  %v796_v23 = vstv %s1834_s12 }
 0x1b8   : > { %1217 = vrcp.f32 %v667_v46  ;;  %v732_v18 = vsel %vm727_vm6, 1.5707964, %v731_v34 }
 0x1b9   : > { %v679_v14 = vmul.f32 %v677_v6, %v677_v6 }
 0x1bb   : > { %v1210_v8 = vpop.eup %1209 }
 0x1bc   : > { %v1212_v26 = vpop.eup %1211  ;;  %v706_v9 = vsub.f32 0.0, %v1210_v8 }
 0x1bd   : > { %v710_v28 = vmul.f32 %v1212_v26, %v1055_v17  ;;  %v682_v26 = vadd.f32 %v1875_v56, %v1872_v55 }
 0x1bf   : > { %v711_v37 = vsel %vm1911_vm12, %v710_v28, %v1885_v63 }
 0x1c0   : > { %v712_v39 = vsel %vm698_vm5, %v706_v9, %v711_v37  ;;  %v683_v9 = vsub.f32 %v681_v19, %v682_v26  ;;  %vm786_vm5 = vcmp.eq.s32.totalorder %v1832_v12, 0 }
 0x1c1   : > { %v713_v40 = vmul.f32 %v712_v39, %v712_v39 }
 0x1c2   : > { %v687_v30 = vmul.f32 %v683_v9, %v683_v9 }
 0x1c3   : > { %v1214_v27 = vpop.eup %1213  ;;  %v714_v42 = vmul.f32 0.080537446, %v713_v40 }
 0x1c4   : > { %v1216_v29 = vpop.eup %1215  ;;  %v735_v31 = vsub.f32 0.0, %v1214_v27 }
 0x1c5   : > { %v739_v38 = vmul.f32 %v1216_v29, %v1058_v21  ;;  %v1056_v50 = vadd.f32 -0.13877685, %v714_v42  ;;  %v1218_v17 = vpop.eup %1217  ;;  %v680_v21 = vadd.f32 %v679_v14, %v678_v33 }
 0x1c6   : > { %v669_v20 = vmul.f32 %v1218_v17, %v655_v32 }
 0x1c7   : > { %v740_v41 = vsel %vm1915_vm13, %v739_v38, %v1888_v49  ;;  %v716_v25 = vmul.f32 %v1056_v50, %v713_v40  ;;  %1219 = vrcp.f32 %v680_v21  ;;  %v688_v49 = vmul.f32 %v1867_v51, %v1867_v51 }
 0x1c8   : > { %v741_v45 = vsel %vm727_vm6, %v735_v31, %v740_v41  ;;  %v760_v28 = vsub.f32 1.0, %v669_v20  ;;  %vm756_vm14 = vcmp.gt.f32.partialorder %v669_v20, 0.5 }
 0x1c9   : > { %v742_v47 = vmul.f32 %v741_v45, %v741_v45  ;;  %v717_v62 = vadd.f32 0.19977711, %v716_v25  ;;  %v689_v57 = vadd.f32 %v688_v49, %v687_v30  ;;  %v1061_v36 = vsel %vm756_vm14, 1.0, %v1490_v11 }
 0x1cb   : > { %v743_v52 = vmul.f32 0.080537446, %v742_v47  ;;  %v718_v0 = vmul.f32 %v717_v62, %v713_v40  ;;  %v690_v58 = vmul.f32 0.25, %v689_v57 }
 0x1cd   : > { %v1059_v61 = vadd.f32 -0.13877685, %v743_v52  ;;  %v1057_v1 = vadd.f32 -0.3333295, %v718_v0 }
 0x1cf   : > { %v745_v48 = vmul.f32 %v1059_v61, %v742_v47  ;;  %v720_v44 = vmul.f32 %v1057_v1, %v713_v40  ;;  %v790_v61 = vstv %s1838_s0 }
 0x1d0   : > { %v791_v62 = vsel %vm789_vm3, %v790_v61, 0.0 }
 0x1d1   : > { %v746_v24 = vadd.f32 0.19977711, %v745_v48  ;;  %v721_v3 = vmul.f32 %v720_v44, %v712_v39  ;;  %v794_v48 = vstv %s1836_s14 }
 0x1d3   : > { %v747_v2 = vmul.f32 %v746_v24, %v742_v47  ;;  %v722_v15 = vadd.f32 %v721_v3, %v712_v39 }
 0x1d4   : > { %v1220_v32 = vpop.eup %1219 }
 0x1d5   : > { %v1060_v13 = vadd.f32 -0.3333295, %v747_v2  ;;  %v723_v4 = vadd.f32 %v722_v15, %v703_v7  ;;  %v765_v56 = vmul.f32 %v1220_v32, %v690_v58 }
 0x1d7   : > { %v749_v43 = vmul.f32 %v1060_v13, %v742_v47  ;;  %v766_v39 = vsub.f32 %v669_v20, %v765_v56 }
 0x1d9   : > { %v750_v16 = vmul.f32 %v749_v43, %v741_v45 }
 0x1db   : > { %v751_v8 = vadd.f32 %v750_v16, %v741_v45  ;;  %v640_v45 = vld [vmem:[%s1754_s27] sm:$0xff] }
 0x1dc   : > { %vm771_vm15 = vcmp.gt.f32.partialorder %v640_v45, 0.0 }
 0x1dd   : > { %v752_v63 = vadd.f32 %v751_v8, %v732_v18 }
 0x1df   : > { %v753_v5 = vsub.f32 %v723_v4, %v752_v63 }
 0x1e1   : > { %v754_v27 = vmul.f32 0.40528473, %v753_v5 }
 0x1e3   : > { %v755_v29 = vmul.f32 %v754_v27, %v753_v5 }
 0x1e5   : > { %v761_v31 = vadd.f32 %v760_v28, %v755_v29  ;;  %v759_v55 = vmul.f32 %v1061_v36, %v755_v29 }
 0x1e7   : > { %1221 = vrcp.f32 %v761_v31 }
 0x1f4   : > { %v1222_v37 = vpop.eup %1221 }
 0x1f5   : > { %v763_v38 = vmul.f32 %v1222_v37, %v759_v55 }
 0x1f7   : > { %v767_v40 = vmul.f32 %v763_v38, %v755_v29 }
 0x1f9   : > { %v768_v41 = vsub.f32 %v766_v39, %v767_v40 }
 0x1fb   : > { %v769_v46 = vsub.f32 1.0, %v768_v41 }
 0x1fd   : > { %v770_v42 = vmul.f32 %v769_v46, %v640_v45 }
 0x1ff   : > { %vm772_vm1 = vcmp.eq.f32.partialorder %v770_v42, %v770_v42 }
 0x200   : > { %vm773_vm2 = vmand %vm771_vm15, %vm772_vm1 }
 0x201   : > { %v774_v51 = vsel %vm773_vm2, %v770_v42, 0.0 }
 0x202   : > { %v775_v47 = vsel %vm545_vm0, %v774_v51, 0.0  ;;  %vm787_vm0 = vcmp.eq.s32.totalorder %v1832_v12, 1 }
 0x203   : > { %776 = vadd.xlane.f32.xlu0 %v775_v47 }
 0x28c   : > { %v777_v50 = vpop.xlane.xlu0 %776 }
 0x28d   : > { %v778_v52 = vrot.slane %v777_v50, 4 }
 0x28f   : > { %v779_v53 = vadd.f32 %v778_v52, %v777_v50 }
 0x291   : > { %v780_v54 = vrot.slane %v779_v53, 2 }
 0x293   : > { %v781_v59 = vadd.f32 %v780_v54, %v779_v53 }
 0x295   : > { %v782_v60 = vrot.slane %v781_v59, 1 }
 0x297   : > { %v783_v25 = vadd.f32 %v782_v60, %v781_v59 }
 0x299   : > { %1074 = vpush %v783_v25 }
 0x2ca   : > { %s1075_s22 = spop %1074 }
 0x2cb   : > { %v792_v22 = vstv %s1075_s22 }
 0x2cc   : > { %v793_v0 = vsel %vm788_vm4, %v792_v22, %v791_v62 }
 0x2cd   : > { %v795_v24 = vsel %vm787_vm0, %v794_v48, %v793_v0 }
 0x2ce   : > { %v797_v1 = vsel %vm786_vm5, %v796_v23, %v795_v24 }
 0x2cf   : > { %798 = vst [vmem:[%s1842_s2] sm:$0xff] %v797_v1 }
 0x2d0 PF: > { %p1062_p0 = scmp.ne.s32.totalorder %s1750_s7, 0 }
 0x2d2   : > { %802 = sbr.rel (%p1062_p0) target bundleno = 733 (0x2dd), region = 68 }
 0x2d7   : > { %vm805_vm6 = vcmp.eq.s32.totalorder %v1832_v12, 2  ;;  %vm806_vm7 = vcmp.eq.s32.totalorder %v1832_v12, 3  ;;  %vm804_vm8 = vcmp.eq.s32.totalorder %v1832_v12, 1  ;;  %v807_v2 = vstv %s1838_s0 }
 0x2d8   : > { %v810_v10 = vstv %s1836_s14  ;;  %vm803_vm9 = vcmp.eq.s32.totalorder %v1832_v12, 0  ;;  %v808_v6 = vsel %vm806_vm7, %v807_v2, 0.0  ;;  %v812_v11 = vstv %s1834_s12 }
 0x2d9   : > { %v809_v35 = vsel %vm805_vm6, 0.0, %v808_v6 }
 0x2da   : > { %v811_v44 = vsel %vm804_vm8, %v810_v10, %v809_v35 }
 0x2db   : > { %v813_v13 = vsel %vm803_vm9, %v812_v11, %v811_v44 }
 0x2dc   : > { %814 = vst [vmem:[%s1842_s2] sm:$0xff] %v813_v13 }
 0x2dd PF: > { %s2073_s8 = sld [smem:[#allocation22_spill]]  ;;  %s831_s18 = sshll.u32 %s1842_s2, 4  ;;  %s832_s18 = int_to_ptr.vmem [resolvable:$true] %s831_s18 }
 0x2de   : > { %s2074_s15 = sld [smem:[#allocation21_spill]]  ;;  %s816_s11 = scalar_lea.sflag [#allocation6], %s1723_s4 }
 0x2df   : > { %s2076_s10 = sld [smem:[#allocation33_spill]]  ;;  %s1371_s23 = scalar_lea.vmem %s832_s18, 128 }
 0x2e0   : > { %p1372_p2 = scmp.ne.s32.totalorder %s832_s18, %s1371_s23  ;;  %s1491_s24 = smov [#allocation13]  }
 0x2e1   : > { %s1375_s17 = sshll.u32 %s1491_s24, 4  ;;  %s1376_s17 = int_to_ptr.vmem [resolvable:$false] %s1375_s17 }
 0x2e2   : > { %p1373_p3 = pnand %p1372_p2, %p1599_p9  ;;  %s1377_s7 = scalar_lea.vmem %s1376_s17, 256 }
 0x2e3   : > { %s1064_s9 = sshll.u32 %s2073_s8, 1  ;;  %p1378_p10 = scmp.lt.s32.totalorder %s832_s18, %s1376_s17 }
 0x2e4   : > { %s827_s6 = sadd.s32 %s2074_s15, %s1064_s9  ;;  %p1374_p1 = pneg %p1373_p3 }
 0x2e5   : > { %s1065_s30 = sshll.u32 %s827_s6, 7  ;;  %p1379_p11 = scmp.lt.s32.totalorder %s1377_s7, %s1371_s23 }
 0x2e6   : > { %s829_s20 = scalar_lea.hbm %s2076_s10, %s1065_s30 }
 0x2e7   : > { %p1380_p13 = por %p1379_p11, %p1378_p10 }
 0x2e9   : > { %p1381_p4 = pnand %p1380_p13, %p1374_p1 }
 0x2eb   : > { %1384 = shalt.err (!%p1381_p4)
}
 0x2ec   : > { %s1385_s27 = scalar_lea.hbm %s829_s20, 128  ;;  %s1389_s14 = scalar_lea.hbm %s2076_s10, 512 }
 0x2ed   : > { %p1386_p5 = scmp.ne.s32.totalorder %s829_s20, %s1385_s27  ;;  %p1390_p8 = scmp.lt.s32.totalorder %s829_s20, %s2076_s10 }
 0x2ee   : > { %p1391_p0 = scmp.lt.s32.totalorder %s1389_s14, %s1385_s27 }
 0x2ef   : > { %p1387_p6 = pnand %p1386_p5, %p1599_p9 }
 0x2f0   : > { %p1392_p2 = por %p1391_p0, %p1390_p8 }
 0x2f1   : > { %p1388_p7 = pneg %p1387_p6 }
 0x2f3   : > { %p1393_p3 = pnand %p1392_p2, %p1388_p7 }
 0x2f5   : > { %1396 = shalt.err (!%p1393_p3)
}
 0x2f6   : > { %1086 = dma.vmem_to_hbm [thread:$0]  (%p1599_p9), %s832_s18, 128, %s829_s20, %s816_s11  }
 0x2f7 PF: > { %s2077_s26 = sld [smem:[#allocation23_spill]] }
 0x2f8   : > { %s2078_s16 = sld [smem:[#allocation19_spill]] }
 0x2fd   : > { %p1109_p1 = scmp.ge.s32.totalorder %s2077_s26, 2 }
 0x2fe   : > { %s843_s8 = sand.u32 1, %s2078_s16  }
 0x2ff   : > { %p1105_p10 = pnand %p1109_p1, %p1605_p12  ;;  %s844_s15 = scalar_lea.sflag [#allocation6], %s843_s8 }
 0x301   : > { %p1106_p11 = pneg %p1105_p10 }
 0x303   : > { %1444 = dma.done.wait (%p1106_p11), %s844_s15, 128  }
 0x304   : > { %1446 = vsyncadd (%p1106_p11), %s844_s15, 4294967168  ;;  %s32_s30 = sadd.s32 1, %s2077_s26   ;;  %s2080_s9 = sld [smem:[#allocation20_spill]] }
 0x305   : > { %p29_p13 = scmp.ge.s32.totalorder %s32_s30, 6   ;;  %s2081_s26 = sld [smem:[#allocation30_spill]] }
 0x306   : > { %s2082_s13 = sld [smem:[#allocation25_spill]]  ;;  %s2084_s24 = smov %s1453_s25 }
 0x307   : > { %s2083_s6 = sld [smem:[#allocation26_spill]]  ;;  %s2086_s27 = smov %s1469_s28 }
 0x308   : > { %s2087_s0 = smov %s1473_s29 }
 0x309   :  { %31 = sbr.rel (!%p29_p13) target bundleno = 19 (0x13), region = 147 }
 0x30a   : > { %s2085_s25 = smov %s2080_s9 }
 0x30c   : > { %s2088_s28 = smov %s2082_s13 }
 0x30d   : > { %s2089_s29 = smov %s2083_s6 }
 0x30e   :  { %849 = vsyncpa [#allocation5], 1 }
 0x30f   :  { %851 = vsyncpa [#allocation5 + $0x1], 1 }
 0x310   :  { %852 = vsyncpa [#allocation8], 1 }
 0x311   :  { %854 = vsyncpa [#allocation8 + $0x1], 1 }
 0x312   :  { %855 = vsyncpa [#allocation11], 1 }
 0x313   :  { %857 = vsyncpa [#allocation11 + $0x1], 1 }
 0x314   :  { %858 = vsyncpa [#allocation6], 1 }
 0x315   :  { %860 = vsyncpa [#allocation6 + $0x1], 1 }

</bundles_post_ra>
